<compile_context>
chip_gen: v7x
topology: tpu7x:2x2x1
jax: 0.10.0
libtpu: 0.0.40
codegen_flags: <defaults>
</compile_context>

<pallas_src>
import jax
import jax.numpy as jnp
from jax.experimental import pallas as pl
from jax.experimental.pallas import tpu as pltpu

ALPHA = 0.2          # LeakyReLU negative slope in GAT attention
NEG_INF = -9e15      # same mask value as the PyTorch reference


def dgi_gat_kernel(seq1_ref, seq2_ref, adj_ref, Waug_ref, a2_ref, Wb_ref, bb_ref,
                   out_ref):
    # seq1_ref/seq2_ref : (1, N, Fin) f32   original / corrupted node features
    # adj_ref           : (1, N, N)   f32   adjacency (>0 means edge)
    # Waug_ref          : (Fin, H+1)  bf16  [W | W@a1]
    # a2_ref            : (1, H)      f32   a2 attention vector (row form)
    # Wb_ref            : (H, H)      f32   bilinear critic weight
    # bb_ref            : (1, 1)      f32   bilinear critic bias
    # out_ref           : (1, 1, 2N)  f32   logits  [sc_pos | sc_neg]
    N = adj_ref.shape[1]
    H = Wb_ref.shape[0]

    # One compare over the raw f32 adjacency -- no int8 unpack/upcast, no wrapper pass.
    mask = adj_ref[0] > 0.0                                                   # (N, N) bool

    def gat_layer(x_f32):
        # Feature transform + a1 projection in one (N,Fin)@(Fin,H+1) MXU pass.
        x_bf = x_f32.astype(jnp.bfloat16)
        hf = jnp.dot(x_bf, Waug_ref[...], preferred_element_type=jnp.float32)  # (N, H+1)
        h = hf[:, :H]                                                          # (N, H) f32
        f1 = hf[:, H:H + 1]                                                    # (N, 1)
        # j-side projection lane-major: (1,H)x(N,H)^T -> (1,N); avoids the
        # (N,1)->(1,N) XLU transpose the softmax already competes for.
        f2_row = jax.lax.dot_general(a2_ref[...], h, (((1,), (1,)), ((), ())),
                                     preferred_element_type=jnp.float32)       # (1, N)

        e = f1 + f2_row                                                        # (N, N)
        # LeakyReLU via max(e, alpha*e) (alpha < 1) + a single masked select.
        e = jnp.where(mask, jnp.maximum(e, ALPHA * e), NEG_INF)
        e = e - jnp.max(e, axis=-1, keepdims=True)                             # stable softmax
        p = jnp.exp(e)
        inv = pl.reciprocal(jnp.sum(p, axis=-1, keepdims=True), approx=True)
        # bf16 attention halves the att@h MXU input width (keep on v6e/v7x; on v5e
        # the pack lands on the f32 VALU -- re-measure there if VALU-bound).
        att = (p * inv).astype(jnp.bfloat16)                                   # (N, N)
        hp = jnp.dot(att, h.astype(jnp.bfloat16),
                     preferred_element_type=jnp.float32)                       # (N, H)
        # ELU; clamp the exp argument so the unselected branch never overflows.
        return jnp.where(hp > 0, hp, jnp.exp(jnp.minimum(hp, 0.0)) - 1.0)

    h1 = gat_layer(seq1_ref[0])                   # (N, H)  original graph
    h2 = gat_layer(seq2_ref[0])                   # (N, H)  corrupted graph

    # AvgReadout (msk=None) + exact sigmoid (tiny (1,H) op -- no approx error here).
    c = jnp.mean(h1, axis=0, keepdims=True)                                    # (1, H)
    c = 1.0 / (1.0 + jnp.exp(-c))

    # Bilinear critic sc[n] = h[n] @ Wb @ c^T + b, fused over both graphs:
    # u = (Wb @ c^T)^T lane-major, then one (1,H)x(2N,H)^T MXU pass and a single
    # unmasked lane-dense (1, 2N) store.
    u = jax.lax.dot_general(c, Wb_ref[...], (((1,), (1,)), ((), ())),
                            preferred_element_type=jnp.float32)                # (1, H)
    h12 = jnp.concatenate([h1, h2], axis=0)                                    # (2N, H)
    sc = jax.lax.dot_general(u, h12, (((1,), (1,)), ((), ())),
                             preferred_element_type=jnp.float32)               # (1, 2N)
    out_ref[0] = sc + bb_ref[...]


def _vmem_limit_bytes(N, Fin, H):
    f32 = 4
    # double-buffered input/output blocks
    blocks = 2 * (2 * N * Fin * f32 + N * N * f32 + Fin * (H + 1) * 2
                  + H * f32 + H * H * f32 + f32 + 2 * N * f32)
    # live in-kernel temporaries (e, p f32; att bf16; h / hp / h12 for both graphs)
    temps = 2 * N * N * f32 + N * N * 2 + 6 * N * H * f32
    est = int(1.5 * (blocks + temps))
    # keep below v7x's 64 MiB physical VMEM while never starving the compiler
    return min(48 * 1024 * 1024, max(16 * 1024 * 1024, est))


def dgi_gat_forward(seq1, seq2, adj, params, sparse=False, msk=None,
                    samp_bias1=None, samp_bias2=None):
    # TODO(synk): sparse adjacency (sparse=True) and msk-weighted readout not implemented.
    assert not sparse and msk is None
    W, a1, a2, Wb, bb = params
    B, N, Fin = seq1.shape
    H = W.shape[1]

    # Fold a1 into the feature transform: [W | W@a1] (tiny; negligible per-call cost).
    W_aug = jnp.concatenate([W, W @ a1], axis=1).astype(jnp.bfloat16)          # (Fin, H+1)
    a2_row = a2.reshape(1, H).astype(jnp.float32)                              # (1, H)

    full2d = lambda b: (0, 0)

    logits3 = pl.pallas_call(
        dgi_gat_kernel,
        out_shape=jax.ShapeDtypeStruct((B, 1, 2 * N), jnp.float32),
        grid_spec=pltpu.PrefetchScalarGridSpec(
            num_scalar_prefetch=0,
            grid=(B,),
            in_specs=[
                pl.BlockSpec((1, N, Fin), lambda b: (b, 0, 0)),   # seq1 (f32, cast in-kernel)
                pl.BlockSpec((1, N, Fin), lambda b: (b, 0, 0)),   # seq2
                pl.BlockSpec((1, N, N), lambda b: (b, 0, 0)),     # adj (f32, masked in-kernel)
                pl.BlockSpec((Fin, H + 1), full2d),               # [W | W@a1]  bf16
                pl.BlockSpec((1, H), full2d),                     # a2 row      f32
                pl.BlockSpec((H, H), full2d),                     # bilinear Wb
                pl.BlockSpec((1, 1), full2d),                     # bilinear bias
            ],
            out_specs=pl.BlockSpec((1, 1, 2 * N), lambda b: (b, 0, 0)),
        ),
        compiler_params=pltpu.CompilerParams(
            dimension_semantics=(pltpu.PARALLEL,),
            vmem_limit_bytes=_vmem_limit_bytes(N, Fin, H)),
    )(seq1, seq2, adj, W_aug, a2_row, Wb.astype(jnp.float32), bb.astype(jnp.float32))

    logits = logits3.reshape(B, 2 * N)

    # samp_bias1/samp_bias2 (if given) are simple additive biases on each half.
    if samp_bias1 is not None:
        logits = logits.at[:, :N].add(samp_bias1)
    if samp_bias2 is not None:
        logits = logits.at[:, N:].add(samp_bias2)
    return logits


def dgi_gat_reference(seq1, seq2, adj, params):
    """Pure-JAX f32 reference of the same forward pass (for tolerance validation)."""
    W, a1, a2, Wb, bb = params
    hi = jax.lax.Precision.HIGHEST

    def gat(x):
        h = jnp.einsum('bnf,fh->bnh', x, W, precision=hi)
        f1 = jnp.einsum('bnh,ho->bno', h, a1, precision=hi)
        f2 = jnp.einsum('bnh,ho->bno', h, a2, precision=hi)
        e = f1 + jnp.swapaxes(f2, 1, 2)
        e = jnp.where(e > 0, e, ALPHA * e)
        e = jnp.where(adj > 0, e, NEG_INF)
        att = jax.nn.softmax(e, axis=-1)
        hp = jnp.einsum('bnm,bmh->bnh', att, h, precision=hi)
        return jnp.where(hp > 0, hp, jnp.exp(jnp.minimum(hp, 0.0)) - 1.0)

    h1 = gat(seq1)
    h2 = gat(seq2)
    c = jax.nn.sigmoid(jnp.mean(h1, axis=1))                                   # (B, H)
    u = jnp.einsum('bj,kj->bk', c, Wb, precision=hi)                           # (B, H)
    sc1 = jnp.einsum('bnk,bk->bn', h1, u, precision=hi) + bb[0, 0]
    sc2 = jnp.einsum('bnk,bk->bn', h2, u, precision=hi) + bb[0, 0]
    return jnp.concatenate([sc1, sc2], axis=1)


def init_params(key, n_in, n_h):
    k1, k2, k3, k4 = jax.random.split(key, 4)
    W = jax.random.normal(k1, (n_in, n_h), jnp.float32) * (1.0 / jnp.sqrt(n_in))
    a1 = jax.random.normal(k2, (n_h, 1), jnp.float32) * (1.0 / jnp.sqrt(n_h))
    a2 = jax.random.normal(k3, (n_h, 1), jnp.float32) * (1.0 / jnp.sqrt(n_h))
    Wb = jax.random.normal(k4, (n_h, n_h), jnp.float32) * (1.0 / jnp.sqrt(n_h))
    bb = jnp.zeros((1, 1), jnp.float32)
    return (W, a1, a2, Wb, bb)


if __name__ == "__main__":
    B, N, F_IN, N_H = 2, 128, 64, 32

    key = jax.random.PRNGKey(0)
    k_seq, k_perm, k_adj, k_par = jax.random.split(key, 4)

    seq1 = jax.random.normal(k_seq, (B, N, F_IN), jnp.float32)
    # corrupted features: row (node) shuffle of seq1 (standard DGI negative sampling)
    perm = jax.random.permutation(k_perm, N)
    seq2 = seq1[:, perm, :]

    # random symmetric adjacency with self-loops
    a = jax.random.bernoulli(k_adj, 0.1, (B, N, N)).astype(jnp.float32)
    adj = jnp.maximum(a, jnp.transpose(a, (0, 2, 1)))
    adj = jnp.maximum(adj, jnp.eye(N, dtype=jnp.float32)[None])

    params = init_params(k_par, F_IN, N_H)

    logits = dgi_gat_forward(seq1, seq2, adj, params,
                             sparse=False, msk=None,
                             samp_bias1=None, samp_bias2=None)
    logits = jax.block_until_ready(logits)

    assert logits.shape == (B, 2 * N) and logits.dtype == jnp.float32
    assert bool(jnp.all(jnp.isfinite(logits)))

    # Tolerance check against the pure-JAX f32 reference (bf16 MXU inputs + approx
    # softmax reciprocal -> not bit-exact, so validate with an explicit tolerance).
    ref = dgi_gat_reference(seq1, seq2, adj, params)
    assert bool(jnp.allclose(logits, ref, rtol=0.1, atol=0.2)), (
        "max |diff| = %f" % float(jnp.max(jnp.abs(logits - ref))))

    print("KERNEL_OK")
</pallas_src>

<mosaic_0001>
module attributes {stable_mosaic.version = 11 : i64} {
  func.func @dgi_gat_kernel(%arg0: i32, %arg1: memref<1x128x64xf32, #tpu.memory_space<vmem>>, %arg2: memref<1x128x64xf32, #tpu.memory_space<vmem>>, %arg3: memref<1x128x128xf32, #tpu.memory_space<vmem>>, %arg4: memref<64x33xbf16, #tpu.memory_space<vmem>>, %arg5: memref<1x32xf32, #tpu.memory_space<vmem>>, %arg6: memref<32x32xf32, #tpu.memory_space<vmem>>, %arg7: memref<1x1xf32, #tpu.memory_space<vmem>>, %arg8: memref<1x1x256xf32, #tpu.memory_space<vmem>>) attributes {dimension_semantics = [#tpu.dimension_semantics<parallel>], iteration_bounds = array<i64: 2>, scalar_prefetch = 0 : i64, scratch_operands = 0 : i64, tpu.core_type = #tpu.core_type<tc>, window_params = [{transform_indices = @transform_0, window_bounds = array<i64: 1, 128, 64>}, {transform_indices = @transform_1, window_bounds = array<i64: 1, 128, 64>}, {transform_indices = @transform_2, window_bounds = array<i64: 1, 128, 128>}, {pipeline_mode = #tpu.pipeline_mode<synchronous>, transform_indices = @transform_3, window_bounds = array<i64: 64, 33>}, {pipeline_mode = #tpu.pipeline_mode<synchronous>, transform_indices = @transform_4, window_bounds = array<i64: 1, 32>}, {pipeline_mode = #tpu.pipeline_mode<synchronous>, transform_indices = @transform_5, window_bounds = array<i64: 32, 32>}, {pipeline_mode = #tpu.pipeline_mode<synchronous>, transform_indices = @transform_6, window_bounds = array<i64: 1, 1>}, {transform_indices = @transform_7, window_bounds = array<i64: 1, 1, 256>}]} {
    %c0 = arith.constant 0 : index
    %c0_0 = arith.constant 0 : index
    %c0_1 = arith.constant 0 : index
    %0 = vector.load %arg3[%c0, %c0_0, %c0_1] : memref<1x128x128xf32, #tpu.memory_space<vmem>>, vector<1x128x128xf32>
    %1 = vector.shape_cast %0 : vector<1x128x128xf32> to vector<128x128xf32>
    %cst = arith.constant 0.000000e+00 : f32
    %2 = vector.broadcast %cst : f32 to vector<128x128xf32>
    %3 = arith.cmpf ogt, %1, %2 : vector<128x128xf32>
    %c0_2 = arith.constant 0 : index
    %c0_3 = arith.constant 0 : index
    %c0_4 = arith.constant 0 : index
    %4 = vector.load %arg1[%c0_2, %c0_3, %c0_4] : memref<1x128x64xf32, #tpu.memory_space<vmem>>, vector<1x128x64xf32>
    %5 = vector.shape_cast %4 : vector<1x128x64xf32> to vector<128x64xf32>
    %6 = arith.truncf %5 : vector<128x64xf32> to vector<128x64xbf16>
    %c0_5 = arith.constant 0 : index
    %c0_6 = arith.constant 0 : index
    %7 = vector.load %arg4[%c0_5, %c0_6] : memref<64x33xbf16, #tpu.memory_space<vmem>>, vector<64x33xbf16>
    %cst_7 = arith.constant dense<0.000000e+00> : vector<128x33xf32>
    %8 = tpu.matmul %6, %7, %cst_7 {dimension_numbers = #tpu.dot_dimension_numbers<[1], [0], [0], [1], [0, 0, 1, 1], [], []>} : vector<128x64xbf16>, vector<64x33xbf16>, vector<128x33xf32> -> vector<128x33xf32>
    %9 = vector.extract_strided_slice %8 {offsets = [0, 0], sizes = [128, 32], strides = [1, 1]} : vector<128x33xf32> to vector<128x32xf32>
    %10 = vector.extract_strided_slice %8 {offsets = [0, 32], sizes = [128, 1], strides = [1, 1]} : vector<128x33xf32> to vector<128x1xf32>
    %c0_8 = arith.constant 0 : index
    %c0_9 = arith.constant 0 : index
    %11 = vector.load %arg5[%c0_8, %c0_9] : memref<1x32xf32, #tpu.memory_space<vmem>>, vector<1x32xf32>
    %cst_10 = arith.constant dense<0.000000e+00> : vector<1x128xf32>
    %12 = tpu.matmul %11, %9, %cst_10 {dimension_numbers = #tpu.dot_dimension_numbers<[1], [1], [0], [0], [0, 0, 1, 0], [], []>} : vector<1x32xf32>, vector<128x32xf32>, vector<1x128xf32> -> vector<1x128xf32>
    %13 = vector.broadcast %10 : vector<128x1xf32> to vector<128x128xf32>
    %14 = vector.broadcast %12 : vector<1x128xf32> to vector<128x128xf32>
    %15 = arith.addf %13, %14 : vector<128x128xf32>
    %cst_11 = arith.constant 2.000000e-01 : f32
    %16 = vector.broadcast %cst_11 : f32 to vector<128x128xf32>
    %17 = arith.mulf %16, %15 : vector<128x128xf32>
    %18 = arith.maximumf %15, %17 : vector<128x128xf32>
    %cst_12 = arith.constant -9.000000e+15 : f32
    %19 = vector.broadcast %cst_12 : f32 to vector<128x128xf32>
    %20 = arith.select %3, %18, %19 : vector<128x128xi1>, vector<128x128xf32>
    %cst_13 = arith.constant dense<0xFF800000> : vector<128xf32>
    %21 = vector.multi_reduction <maximumf>, %20, %cst_13 [1] : vector<128x128xf32> to vector<128xf32>
    %22 = vector.shape_cast %21 : vector<128xf32> to vector<128x1xf32>
    %23 = vector.broadcast %22 : vector<128x1xf32> to vector<128x128xf32>
    %24 = arith.subf %20, %23 : vector<128x128xf32>
    %25 = math.exp %24 : vector<128x128xf32>
    %cst_14 = arith.constant dense<0.000000e+00> : vector<128xf32>
    %26 = vector.multi_reduction <add>, %25, %cst_14 [1] : vector<128x128xf32> to vector<128xf32>
    %27 = vector.shape_cast %26 : vector<128xf32> to vector<128x1xf32>
    %28 = tpu.reciprocal %27 {approx = true} : vector<128x1xf32> -> vector<128x1xf32>
    %29 = vector.broadcast %28 : vector<128x1xf32> to vector<128x128xf32>
    %30 = arith.mulf %25, %29 : vector<128x128xf32>
    %31 = arith.truncf %30 : vector<128x128xf32> to vector<128x128xbf16>
    %32 = arith.truncf %9 : vector<128x32xf32> to vector<128x32xbf16>
    %cst_15 = arith.constant dense<0.000000e+00> : vector<128x32xf32>
    %33 = tpu.matmul %31, %32, %cst_15 {dimension_numbers = #tpu.dot_dimension_numbers<[1], [0], [0], [1], [0, 0, 1, 1], [], []>} : vector<128x128xbf16>, vector<128x32xbf16>, vector<128x32xf32> -> vector<128x32xf32>
    %cst_16 = arith.constant 0.000000e+00 : f32
    %34 = vector.broadcast %cst_16 : f32 to vector<128x32xf32>
    %35 = arith.cmpf ogt, %33, %34 : vector<128x32xf32>
    %cst_17 = arith.constant 0.000000e+00 : f32
    %36 = vector.broadcast %cst_17 : f32 to vector<128x32xf32>
    %37 = arith.minimumf %33, %36 : vector<128x32xf32>
    %38 = math.exp %37 : vector<128x32xf32>
    %cst_18 = arith.constant 1.000000e+00 : f32
    %39 = vector.broadcast %cst_18 : f32 to vector<128x32xf32>
    %40 = arith.subf %38, %39 : vector<128x32xf32>
    %41 = arith.select %35, %33, %40 : vector<128x32xi1>, vector<128x32xf32>
    %c0_19 = arith.constant 0 : index
    %c0_20 = arith.constant 0 : index
    %c0_21 = arith.constant 0 : index
    %42 = vector.load %arg2[%c0_19, %c0_20, %c0_21] : memref<1x128x64xf32, #tpu.memory_space<vmem>>, vector<1x128x64xf32>
    %43 = vector.shape_cast %42 : vector<1x128x64xf32> to vector<128x64xf32>
    %44 = arith.truncf %43 : vector<128x64xf32> to vector<128x64xbf16>
    %c0_22 = arith.constant 0 : index
    %c0_23 = arith.constant 0 : index
    %45 = vector.load %arg4[%c0_22, %c0_23] : memref<64x33xbf16, #tpu.memory_space<vmem>>, vector<64x33xbf16>
    %cst_24 = arith.constant dense<0.000000e+00> : vector<128x33xf32>
    %46 = tpu.matmul %44, %45, %cst_24 {dimension_numbers = #tpu.dot_dimension_numbers<[1], [0], [0], [1], [0, 0, 1, 1], [], []>} : vector<128x64xbf16>, vector<64x33xbf16>, vector<128x33xf32> -> vector<128x33xf32>
    %47 = vector.extract_strided_slice %46 {offsets = [0, 0], sizes = [128, 32], strides = [1, 1]} : vector<128x33xf32> to vector<128x32xf32>
    %48 = vector.extract_strided_slice %46 {offsets = [0, 32], sizes = [128, 1], strides = [1, 1]} : vector<128x33xf32> to vector<128x1xf32>
    %c0_25 = arith.constant 0 : index
    %c0_26 = arith.constant 0 : index
    %49 = vector.load %arg5[%c0_25, %c0_26] : memref<1x32xf32, #tpu.memory_space<vmem>>, vector<1x32xf32>
    %cst_27 = arith.constant dense<0.000000e+00> : vector<1x128xf32>
    %50 = tpu.matmul %49, %47, %cst_27 {dimension_numbers = #tpu.dot_dimension_numbers<[1], [1], [0], [0], [0, 0, 1, 0], [], []>} : vector<1x32xf32>, vector<128x32xf32>, vector<1x128xf32> -> vector<1x128xf32>
    %51 = vector.broadcast %48 : vector<128x1xf32> to vector<128x128xf32>
    %52 = vector.broadcast %50 : vector<1x128xf32> to vector<128x128xf32>
    %53 = arith.addf %51, %52 : vector<128x128xf32>
    %cst_28 = arith.constant 2.000000e-01 : f32
    %54 = vector.broadcast %cst_28 : f32 to vector<128x128xf32>
    %55 = arith.mulf %54, %53 : vector<128x128xf32>
    %56 = arith.maximumf %53, %55 : vector<128x128xf32>
    %cst_29 = arith.constant -9.000000e+15 : f32
    %57 = vector.broadcast %cst_29 : f32 to vector<128x128xf32>
    %58 = arith.select %3, %56, %57 : vector<128x128xi1>, vector<128x128xf32>
    %cst_30 = arith.constant dense<0xFF800000> : vector<128xf32>
    %59 = vector.multi_reduction <maximumf>, %58, %cst_30 [1] : vector<128x128xf32> to vector<128xf32>
    %60 = vector.shape_cast %59 : vector<128xf32> to vector<128x1xf32>
    %61 = vector.broadcast %60 : vector<128x1xf32> to vector<128x128xf32>
    %62 = arith.subf %58, %61 : vector<128x128xf32>
    %63 = math.exp %62 : vector<128x128xf32>
    %cst_31 = arith.constant dense<0.000000e+00> : vector<128xf32>
    %64 = vector.multi_reduction <add>, %63, %cst_31 [1] : vector<128x128xf32> to vector<128xf32>
    %65 = vector.shape_cast %64 : vector<128xf32> to vector<128x1xf32>
    %66 = tpu.reciprocal %65 {approx = true} : vector<128x1xf32> -> vector<128x1xf32>
    %67 = vector.broadcast %66 : vector<128x1xf32> to vector<128x128xf32>
    %68 = arith.mulf %63, %67 : vector<128x128xf32>
    %69 = arith.truncf %68 : vector<128x128xf32> to vector<128x128xbf16>
    %70 = arith.truncf %47 : vector<128x32xf32> to vector<128x32xbf16>
    %cst_32 = arith.constant dense<0.000000e+00> : vector<128x32xf32>
    %71 = tpu.matmul %69, %70, %cst_32 {dimension_numbers = #tpu.dot_dimension_numbers<[1], [0], [0], [1], [0, 0, 1, 1], [], []>} : vector<128x128xbf16>, vector<128x32xbf16>, vector<128x32xf32> -> vector<128x32xf32>
    %cst_33 = arith.constant 0.000000e+00 : f32
    %72 = vector.broadcast %cst_33 : f32 to vector<128x32xf32>
    %73 = arith.cmpf ogt, %71, %72 : vector<128x32xf32>
    %cst_34 = arith.constant 0.000000e+00 : f32
    %74 = vector.broadcast %cst_34 : f32 to vector<128x32xf32>
    %75 = arith.minimumf %71, %74 : vector<128x32xf32>
    %76 = math.exp %75 : vector<128x32xf32>
    %cst_35 = arith.constant 1.000000e+00 : f32
    %77 = vector.broadcast %cst_35 : f32 to vector<128x32xf32>
    %78 = arith.subf %76, %77 : vector<128x32xf32>
    %79 = arith.select %73, %71, %78 : vector<128x32xi1>, vector<128x32xf32>
    %cst_36 = arith.constant dense<0.000000e+00> : vector<32xf32>
    %80 = vector.multi_reduction <add>, %41, %cst_36 [0] : vector<128x32xf32> to vector<32xf32>
    %81 = vector.shape_cast %80 : vector<32xf32> to vector<1x32xf32>
    %cst_37 = arith.constant 1.280000e+02 : f32
    %82 = vector.broadcast %cst_37 : f32 to vector<1x32xf32>
    %83 = arith.divf %81, %82 : vector<1x32xf32>
    %cst_38 = arith.constant 0.000000e+00 : f32
    %84 = vector.broadcast %cst_38 : f32 to vector<1x32xf32>
    %85 = arith.subf %84, %83 : vector<1x32xf32>
    %86 = math.exp %85 : vector<1x32xf32>
    %cst_39 = arith.constant 1.000000e+00 : f32
    %87 = vector.broadcast %cst_39 : f32 to vector<1x32xf32>
    %88 = arith.addf %87, %86 : vector<1x32xf32>
    %cst_40 = arith.constant 1.000000e+00 : f32
    %89 = vector.broadcast %cst_40 : f32 to vector<1x32xf32>
    %90 = arith.divf %89, %88 : vector<1x32xf32>
    %c0_41 = arith.constant 0 : index
    %c0_42 = arith.constant 0 : index
    %91 = vector.load %arg6[%c0_41, %c0_42] : memref<32x32xf32, #tpu.memory_space<vmem>>, vector<32x32xf32>
    %cst_43 = arith.constant dense<0.000000e+00> : vector<1x32xf32>
    %92 = tpu.matmul %90, %91, %cst_43 {dimension_numbers = #tpu.dot_dimension_numbers<[1], [1], [0], [0], [0, 0, 1, 0], [], []>} : vector<1x32xf32>, vector<32x32xf32>, vector<1x32xf32> -> vector<1x32xf32>
    %93 = tpu.concatenate %41, %79 in 0 : vector<128x32xf32>, vector<128x32xf32> -> vector<256x32xf32>
    %cst_44 = arith.constant dense<0.000000e+00> : vector<1x256xf32>
    %94 = tpu.matmul %92, %93, %cst_44 {dimension_numbers = #tpu.dot_dimension_numbers<[1], [1], [0], [0], [0, 0, 1, 0], [], []>} : vector<1x32xf32>, vector<256x32xf32>, vector<1x256xf32> -> vector<1x256xf32>
    %c0_45 = arith.constant 0 : index
    %c0_46 = arith.constant 0 : index
    %95 = vector.load %arg7[%c0_45, %c0_46] : memref<1x1xf32, #tpu.memory_space<vmem>>, vector<1x1xf32>
    %96 = vector.broadcast %95 : vector<1x1xf32> to vector<1x256xf32>
    %97 = arith.addf %94, %96 : vector<1x256xf32>
    %c0_47 = arith.constant 0 : index
    %c0_48 = arith.constant 0 : index
    %c0_49 = arith.constant 0 : index
    %98 = vector.load %arg8[%c0_47, %c0_48, %c0_49] : memref<1x1x256xf32, #tpu.memory_space<vmem>>, vector<1x1x256xf32>
    %99 = vector.shape_cast %98 : vector<1x1x256xf32> to vector<1x256xf32>
    %100 = vector.shape_cast %97 : vector<1x256xf32> to vector<1x1x256xf32>
    tpu.vector_store %arg8[%c0_47, %c0_48, %c0_49], %100 {strides = array<i32>} : memref<1x1x256xf32, #tpu.memory_space<vmem>>, vector<1x1x256xf32>,
    return
  }
  func.func @transform_0(%arg0: i32) -> (i32, i32, i32) {
    %c0_i32 = arith.constant 0 : i32
    %c0_i32_0 = arith.constant 0 : i32
    %c0_i32_1 = arith.constant 0 : i32
    return %arg0, %c0_i32, %c0_i32_0 : i32, i32, i32
  }
  func.func @transform_1(%arg0: i32) -> (i32, i32, i32) {
    %c0_i32 = arith.constant 0 : i32
    %c0_i32_0 = arith.constant 0 : i32
    %c0_i32_1 = arith.constant 0 : i32
    return %arg0, %c0_i32, %c0_i32_0 : i32, i32, i32
  }
  func.func @transform_2(%arg0: i32) -> (i32, i32, i32) {
    %c0_i32 = arith.constant 0 : i32
    %c0_i32_0 = arith.constant 0 : i32
    %c0_i32_1 = arith.constant 0 : i32
    return %arg0, %c0_i32, %c0_i32_0 : i32, i32, i32
  }
  func.func @transform_3(%arg0: i32) -> (i32, i32) {
    %c0_i32 = arith.constant 0 : i32
    %c0_i32_0 = arith.constant 0 : i32
    %c0_i32_1 = arith.constant 0 : i32
    return %c0_i32, %c0_i32_0 : i32, i32
  }
  func.func @transform_4(%arg0: i32) -> (i32, i32) {
    %c0_i32 = arith.constant 0 : i32
    %c0_i32_0 = arith.constant 0 : i32
    %c0_i32_1 = arith.constant 0 : i32
    return %c0_i32, %c0_i32_0 : i32, i32
  }
  func.func @transform_5(%arg0: i32) -> (i32, i32) {
    %c0_i32 = arith.constant 0 : i32
    %c0_i32_0 = arith.constant 0 : i32
    %c0_i32_1 = arith.constant 0 : i32
    return %c0_i32, %c0_i32_0 : i32, i32
  }
  func.func @transform_6(%arg0: i32) -> (i32, i32) {
    %c0_i32 = arith.constant 0 : i32
    %c0_i32_0 = arith.constant 0 : i32
    %c0_i32_1 = arith.constant 0 : i32
    return %c0_i32, %c0_i32_0 : i32, i32
  }
  func.func @transform_7(%arg0: i32) -> (i32, i32, i32) {
    %c0_i32 = arith.constant 0 : i32
    %c0_i32_0 = arith.constant 0 : i32
    %c0_i32_1 = arith.constant 0 : i32
    return %arg0, %c0_i32, %c0_i32_0 : i32, i32, i32
  }
}

</mosaic_0001>

<bundles_post_ra>
// kernel: tpu_custom_call.1
= control target key start
LH: loop header
LB: loop body
LE: loop exit
PB: predicated region body
PF: predicated region fallthrough
CT: control target
= control target key end

     0   :  { %s4255_s0 = inlined_call_operand.vmem [shape: f32[2,128,64], index: 0, kind: input, shape index: {}]   ;;  %s4256_s1 = inlined_call_operand.vmem [shape: f32[2,128,64], index: 1, kind: input, shape index: {}]   ;;  %s4257_s2 = inlined_call_operand.vmem [shape: f32[2,128,128], index: 2, kind: input, shape index: {}]   ;;  %s4258_s3 = inlined_call_operand.vmem [shape: bf16[64,33], index: 3, kind: input, shape index: {}]   ;;  %s4259_s4 = inlined_call_operand.vmem [shape: f32[1,32], index: 4, kind: input, shape index: {}]   ;;  %s4260_s5 = inlined_call_operand.vmem [shape: f32[32,32], index: 5, kind: input, shape index: {}]   ;;  %s4261_s6 = inlined_call_operand.<no memory space> [shape: f32[1,1], index: 6, kind: input, shape index: {}]   ;;  %s4262_s7 = inlined_call_operand.hbm [shape: f32[2,1,256], index: 7, kind: output, shape index: {}]  }
   0x1   :  { %v12_v0 = vstv %s4261_s6 }
   0x2   :  { %13 = vst [vmem:[#allocation2] sm:$0x1] %v12_v0 }
   0x3   :  { %14 = vsyncpa [#allocation4], 0 }
   0x4   :  { %16 = vsyncpa [#allocation4 + $0x1], 0  ;;  %s3271_s26 = smov 0   ;;  %s3273_s27 = smov 0  }
   0x5   :  { %s3275_s28 = smov 0   ;;  %s3277_s29 = smov 0  }
   0x6 LB: > { %s3292_s6 = sadd.s32 4294967295, %s3219_s29   ;;  %s2321_s30 = sadd.s32 4294967294, %s3219_s29   ;;  %s3219_s29 = sphi %s3277_s29, %s4296_s29   ;;  %s3215_s28 = sphi %s3275_s28, %s4295_s28   ;;  %s3211_s27 = sphi %s3273_s27, %s4294_s27   ;;  %s3207_s26 = sphi %s3271_s26, %s4293_s26  }
   0x7   : > { %s3296_s8 = sadd.s32 1, %s3219_s29   ;;  %s191_s9 = sadd.s32 1, %s3215_s28 }
   0x8   : > { %s188_s10 = ssub.s32 %s3219_s29, %s3296_s8  ;;  %p201_p0 = scmp.ne.s32.totalorder %s3215_s28, %s3211_s27 }
   0x9   : > { %p189_p1 = scmp.eq.s32.totalorder %s188_s10, 0  ;;  %p202_p2 = scmp.eq.s32.totalorder %s3292_s6, 1 }
   0xa   : > { %p207_p3 = scmp.ne.s32.totalorder %s3211_s27, %s3207_s26  ;;  %p208_p4 = scmp.eq.s32.totalorder %s2321_s30, 1 }
   0xb   : > { %s3307_s11 = scalar_select %p189_p1, %s3215_s28, %s191_s9  }
   0xc   : > { %p3309_p5 = por %p202_p2, %p201_p0  ;;  %p3313_p6 = por %p208_p4, %p207_p3 }
   0xd   : > { %p2324_p7 = scmp.ge.s32.totalorder %s3219_s29, 1  ;;  %p262_p8 = scmp.lt.s32.totalorder %s3219_s29, 3 }
   0xf   : > { %p263_p9 = pnand %p2324_p7, %p262_p8 }
  0x10   : > { %v3322_v1 = vld [vmem:[%s4258_s3] sm:$0xff] (!%p263_p9)   ;;  %p304_p10 = scmp.lt.s32.totalorder (!%p263_p9), %s3292_s6, 1  ;;  %v3328_v2 = vld [vmem:[%s4258_s3 + $0x8] sm:$0xff] (!%p263_p9)   ;;  %v3337_v3 = vld [vmem:[%s4258_s3 + $0x10] sm:$0xff] (!%p263_p9)   ;;  %v3221_v4 = vmov (!%p263_p9), 32   ;;  %vm408_vm0 = vcmask (!%p263_p9), 523264   ;;  %v4270_v60 = vlaneseq (!%p263_p9) }
  0x11   : > { %266 = sbr.rel (%p263_p9) target bundleno = 2246 (0x8c6), region = 48  ;;  %2594 = vmatprep.subr.bf16.mxu0 (!%p263_p9), %v3322_v1  ;;  %2953 = vset.pattern.permute.xlu1 (!%p263_p9), %v3221_v4  ;;  %v3354_v8 = vld [vmem:[%s4258_s3 + $0x18] sm:$0xff] (!%p263_p9)   ;;  %v3222_v30 = vmov (!%p263_p9), 0.0|0.0   ;;  %vm4263_vm1 = vmmov (!%p263_p9), 0   ;;  %v4271_v31 = vmov (!%p263_p9), 0.0   ;;  %vm531_vm2 = vcmask (!%p263_p9), 261120  }
  0x12   : > { %2595 = vmatpush3.bf16.msra.mxu0 (!%p263_p9), %v3322_v1  ;;  %2952 = vset.pattern.permute.xlu0 (!%p263_p9), %v3221_v4  ;;  %vm3386_vm3 = vmpackc.low (!%p263_p9), %vm531_vm2, %vm531_vm2  ;;  %v530_v57 = vld [vmem:[%s4259_s4] sm:$0x1] (!%p263_p9)  ;;  %v3422_v63 = vshrl.u32 (!%p263_p9), %v4270_v60, 7  ;;  %s301_s15 = sand.u32 (!%p263_p9), 1, %s3211_s27   ;;  %s2464_s17 = sshll.u32 (!%p263_p9), %s3292_s6, 5 }
  0x13   : > { %2596 = vmatprep.subr.bf16.mxu0 (!%p263_p9), %v3328_v2  ;;  %2787 = vmatprep.subr.bf16.mxu1 (!%p263_p9), %v3222_v30  ;;  %s4213_s22 = scalar_lea.hbm (!%p263_p9), %s4262_s7, %s2464_s17  ;;  %s2224_s23 = scalar_lea.sflag (!%p263_p9), [#allocation4], %s301_s15 }
  0x14   : > { %2650 = vmatprep.mubr.msk.f32.mxu1 (!%p263_p9), %vm4263_vm1, %v4271_v31  ;;  %v3425_v4 = vsub.s32 (!%p263_p9), 0, %v3422_v63 }
  0x16   : > { %2597 = vmatpush3.bf16.msra.mxu0 (!%p263_p9), %v3328_v2 }
  0x17   : > { %2598 = vmatprep.subr.bf16.mxu0 (!%p263_p9), %v3337_v3 }
  0x18   : > { %s305_s18 = scalar_select %p304_p10, %s3292_s6, 1 }
  0x19   : > { %s3227_s6 = smov [#allocation3]  }
  0x1a   : > { %s3339_s21 = sshll.u32 %s305_s18, 7  ;;  %2599 = vmatpush3.bf16.msra.mxu0 %v3337_v3  ;;  %s3161_s25 = sshll.u32 %s3227_s6, 4  ;;  %s3162_s25 = int_to_ptr.vmem [resolvable:$false] %s3161_s25 }
  0x1b   : > { %s3345_s24 = scalar_lea.vmem %s4255_s0, %s3339_s21  ;;  %2600 = vmatprep.subr.bf16.mxu0 %v3354_v8  ;;  %s3431_s16 = scalar_lea.vmem %s4257_s2, %s3339_s21 }
  0x1c   : > { %v352_v5 = vld [vmem:[%s3345_s24] sm:$0xff]  ;;  %v353_v6 = vld [vmem:[%s3345_s24 + $0x8] sm:$0xff]  ;;  %v354_v9 = vld [vmem:[%s3345_s24 + $0x10] sm:$0xff]  ;;  %s3683_s19 = scalar_lea.vmem %s4256_s1, %s3339_s21  ;;  %s3163_s30 = scalar_lea.vmem %s3162_s25, 64 }
  0x1d   : > { %v368_v7 = vpack.c.bf16 %v353_v6, %v352_v5  ;;  %v355_v10 = vld [vmem:[%s3345_s24 + $0x18] sm:$0xff]  ;;  %v356_v11 = vld [vmem:[%s3345_s24 + $0x20] sm:$0xff]  ;;  %v357_v12 = vld [vmem:[%s3345_s24 + $0x28] sm:$0xff] }
  0x1e   : > { %v369_v13 = vpack.c.bf16 %v355_v10, %v354_v9  ;;  %2601 = vmatpush3.bf16.msra.mxu0 %v3354_v8  ;;  %v370_v14 = vpack.c.bf16 %v357_v12, %v356_v11  ;;  %v358_v15 = vld [vmem:[%s3345_s24 + $0x30] sm:$0xff]  ;;  %v359_v16 = vld [vmem:[%s3345_s24 + $0x38] sm:$0xff]  ;;  %v360_v17 = vld [vmem:[%s3345_s24 + $0x40] sm:$0xff] }
  0x1f   : > { %2602 = vmatprep.mubr.msk.bf16.mxu0 %vm408_vm0, %v368_v7  ;;  %v361_v18 = vld [vmem:[%s3345_s24 + $0x48] sm:$0xff]  ;;  %v371_v19 = vpack.c.bf16 %v359_v16, %v358_v15  ;;  %v362_v21 = vld [vmem:[%s3345_s24 + $0x50] sm:$0xff]  ;;  %v363_v22 = vld [vmem:[%s3345_s24 + $0x58] sm:$0xff] }
  0x20   : > { %v372_v20 = vpack.c.bf16 %v361_v18, %v360_v17  ;;  %v364_v23 = vld [vmem:[%s3345_s24 + $0x60] sm:$0xff]  ;;  %v365_v24 = vld [vmem:[%s3345_s24 + $0x68] sm:$0xff]  ;;  %v373_v25 = vpack.c.bf16 %v363_v22, %v362_v21  ;;  %v366_v27 = vld [vmem:[%s3345_s24 + $0x70] sm:$0xff] }
  0x21   : > { %2603 = vmatmul.mubr.msk.bf16.vlgmr.msra.gmra.mrb[0].mxu0 %vm408_vm0, %v369_v13  ;;  %v374_v26 = vpack.c.bf16 %v365_v24, %v364_v23  ;;  %v367_v28 = vld [vmem:[%s3345_s24 + $0x78] sm:$0xff]  ;;  %v3437_v12 = vld [vmem:[%s3431_s16 + $0x8] sm:$0xff] }
  0x22   : > { %2606 = vmatprep.mubr.msk.bf16.mxu0 %vm408_vm0, %v370_v14  ;;  %v375_v29 = vpack.c.bf16 %v367_v28, %v366_v27  ;;  %v3441_v14 = vld [vmem:[%s3431_s16] sm:$0xff]  ;;  %vm337_vm4 = vcmp.gt.f32.partialorder %v3437_v12, 0.0  ;;  %v3454_v28 = vld [vmem:[%s3431_s16 + $0x10] sm:$0xff] }
  0x23   : > { %vm336_vm5 = vcmp.gt.f32.partialorder %v3441_v14, 0.0  ;;  %v3451_v27 = vld [vmem:[%s3431_s16 + $0x20] sm:$0xff]  ;;  %vm338_vm7 = vcmp.gt.f32.partialorder %v3454_v28, 0.0 }
  0x24   : > { %vm340_vm6 = vcmp.gt.f32.partialorder %v3451_v27, 0.0 }
  0x29   : > { %2607 = vmatmul.mubr.msk.bf16.gmra.mrb[4].mxu0 %vm408_vm0, %v371_v19 }
  0x2a   : > { %2610 = vmatprep.mubr.msk.bf16.mxu0 %vm408_vm0, %v372_v20 }
  0x31   : > { %2611 = vmatmul.mubr.msk.bf16.gmra.mrb[8].mxu0 %vm408_vm0, %v373_v25 }
  0x32   : > { %2614 = vmatprep.mubr.msk.bf16.mxu0 %vm408_vm0, %v374_v26 }
  0x39   : > { %2615 = vmatmul.mubr.msk.bf16.gmra.mrb[12].mxu0 %vm408_vm0, %v375_v29  ;;  %v3457_v29 = vld [vmem:[%s3431_s16 + $0x30] sm:$0xff] }
  0x3a   : > { %vm342_vm8 = vcmp.gt.f32.partialorder %v3457_v29, 0.0 }
  0xf4   : > { %v2604_v32 = vpop.f32.mrb[0].mxu0 }
  0xf5   : > { %662 = vperm.xlu1 %2953, %v2604_v32   ;;  %v467_v33 = vpop.f32.mrb[1].mxu0 }
  0xf6   : > { %654 = vperm.xlu0 %2952, %v467_v33   ;;  %v2605_v34 = vpop.f32.mrb[2].mxu0 }
  0xf7   : > { %v2792_v35 = vpack.c.bf16 %v2605_v34, %v2604_v32  ;;  %v470_v36 = vpop.f32.mrb[3].mxu0 }
  0xf8   : > { %v2788_v38 = vpack.c.bf16 %v470_v36, %v467_v33  ;;  %v3460_v33 = vld [vmem:[%s3431_s16 + $0x18] sm:$0xff] }
  0xf9   : > { %666 = vperm.xlu1 %2953, %v2605_v34   ;;  %vm339_vm9 = vcmp.gt.f32.partialorder %v3460_v33, 0.0 }
  0xfa   : > { %658 = vperm.xlu0 %2952, %v470_v36   ;;  %2790 = vmatpush3.bf16.xpose.msk.msra.mxu1 %vm3386_vm3, %v2788_v38 }
  0xfb   : > { %2653 = vmatprep.subr.bf16.mxu0 %v2788_v38  ;;  %2791 = vmatprep.subr.bf16.mxu1 %v3222_v30 }
  0xfc   : > { %2654 = vmatpush3.bf16.msra.mxu0 %v2788_v38  ;;  %v2608_v39 = vpop.f32.mrb[4].mxu0 }
  0xfd   : > { %2655 = vmatprep.subr.bf16.mxu0 %v2792_v35  ;;  %v483_v40 = vpop.f32.mrb[5].mxu0 }
  0xfe   : > { %v2609_v41 = vpop.f32.mrb[6].mxu0  ;;  %670 = vperm.xlu0 %2952, %v483_v40  }
  0xff   : > { %v2800_v42 = vpack.c.bf16 %v2609_v41, %v2608_v39  ;;  %v486_v43 = vpop.f32.mrb[7].mxu0 }
 0x100   : > { %v2796_v44 = vpack.c.bf16 %v486_v43, %v483_v40  ;;  %2656 = vmatpush3.bf16.msra.mxu0 %v2792_v35  ;;  %674 = vperm.xlu1 %2953, %v486_v43  }
 0x102   : > { %2794 = vmatpush3.bf16.xpose.msk.msra.mxu1 %vm3386_vm3, %v2792_v35  ;;  %2657 = vmatprep.subr.bf16.mxu0 %v2796_v44 }
 0x103   : > { %678 = vperm.xlu0 %2952, %v2608_v39   ;;  %2795 = vmatprep.subr.bf16.mxu1 %v3222_v30 }
 0x104   : > { %2658 = vmatpush3.bf16.msra.mxu0 %v2796_v44  ;;  %682 = vperm.xlu1 %2953, %v2609_v41   ;;  %v2612_v45 = vpop.f32.mrb[8].mxu0 }
 0x105   : > { %2659 = vmatprep.subr.bf16.mxu0 %v2800_v42  ;;  %v499_v46 = vpop.f32.mrb[9].mxu0 }
 0x106   : > { %v2613_v47 = vpop.f32.mrb[10].mxu0 }
 0x107   : > { %v2808_v48 = vpack.c.bf16 %v2613_v47, %v2612_v45  ;;  %v502_v49 = vpop.f32.mrb[11].mxu0  ;;  %686 = vperm.xlu0 %2952, %v499_v46  }
 0x108   : > { %2660 = vmatpush3.bf16.msra.mxu0 %v2800_v42  ;;  %v2804_v50 = vpack.c.bf16 %v502_v49, %v499_v46  ;;  %690 = vperm.xlu1 %2953, %v502_v49   ;;  %v3479_v46 = vld [vmem:[%s3431_s16 + $0x40] sm:$0xff] }
 0x109   : > { %vm344_vm10 = vcmp.gt.f32.partialorder %v3479_v46, 0.0 }
 0x10a   : > { %2798 = vmatpush3.bf16.xpose.msk.msra.mxu1 %vm3386_vm3, %v2796_v44  ;;  %2661 = vmatprep.subr.bf16.mxu0 %v2804_v50 }
 0x10b   : > { %2799 = vmatprep.subr.bf16.mxu1 %v3222_v30  ;;  %694 = vperm.xlu0 %2952, %v2612_v45  }
 0x10c   : > { %2662 = vmatpush3.bf16.msra.mxu0 %v2804_v50  ;;  %698 = vperm.xlu1 %2953, %v2613_v47   ;;  %v2616_v51 = vpop.f32.mrb[12].mxu0 }
 0x10d   : > { %2663 = vmatprep.subr.bf16.mxu0 %v2808_v48  ;;  %v515_v52 = vpop.f32.mrb[13].mxu0 }
 0x10e   : > { %v2617_v53 = vpop.f32.mrb[14].mxu0 }
 0x10f   : > { %v2816_v54 = vpack.c.bf16 %v2617_v53, %v2616_v51  ;;  %v518_v55 = vpop.f32.mrb[15].mxu0  ;;  %702 = vperm.xlu0 %2952, %v515_v52  }
 0x110   : > { %2664 = vmatpush3.bf16.msra.mxu0 %v2808_v48  ;;  %v2812_v56 = vpack.c.bf16 %v518_v55, %v515_v52  ;;  %706 = vperm.xlu1 %2953, %v518_v55  }
 0x112   : > { %2802 = vmatpush3.bf16.xpose.msk.msra.mxu1 %vm3386_vm3, %v2800_v42  ;;  %2665 = vmatprep.subr.bf16.mxu0 %v2812_v56 }
 0x113   : > { %2803 = vmatprep.subr.bf16.mxu1 %v3222_v30  ;;  %710 = vperm.xlu0 %2952, %v2616_v51  }
 0x114   : > { %2666 = vmatpush3.bf16.msra.mxu0 %v2812_v56  ;;  %714 = vperm.xlu1 %2953, %v2617_v53  }
 0x115   : > { %2667 = vmatprep.subr.bf16.mxu0 %v2816_v54 }
 0x118   : > { %2668 = vmatpush3.bf16.msra.mxu0 %v2816_v54 }
 0x119   : > { %2685 = vmatprep.subr.bf16.mxu0 %v3322_v1 }
 0x11a   : > { %2806 = vmatpush3.bf16.xpose.msk.msra.mxu1 %vm3386_vm3, %v2804_v50 }
 0x11b   : > { %2807 = vmatprep.subr.bf16.mxu1 %v3222_v30 }
 0x122   : > { %2810 = vmatpush3.bf16.xpose.msk.msra.mxu1 %vm3386_vm3, %v2808_v48  ;;  %v3482_v48 = vld [vmem:[%s3431_s16 + $0x28] sm:$0xff] }
 0x123   : > { %2811 = vmatprep.subr.bf16.mxu1 %v3222_v30  ;;  %vm341_vm11 = vcmp.gt.f32.partialorder %v3482_v48, 0.0 }
 0x12a   : > { %2814 = vmatpush3.bf16.xpose.msk.msra.mxu1 %vm3386_vm3, %v2812_v56 }
 0x12b   : > { %2815 = vmatprep.subr.bf16.mxu1 %v3222_v30 }
 0x132   : > { %2818 = vmatpush3.bf16.xpose.msk.msra.mxu1 %vm3386_vm3, %v2816_v54 }
 0x133   : > { %2819 = vmatprep.subr.bf16.mxu1 %v3222_v30 }
 0x139   : > { %2651 = vmatmul.mubr.msk.f32.vlgmr.msra.gmra.mrb[0].mxu1 %vm531_vm2, %v530_v57 }
 0x13a   : > { %2741 = vmatprep.mubr.msk.f32.mxu1 %vm4263_vm1, %v4271_v31 }
 0x174   : > { %v663_v61 = vpop.permute.xlu1 %662 }
 0x175   : > { %v655_v58 = vpop.permute.xlu0 %654 }
 0x178   : > { %v667_v0 = vpop.permute.xlu1 %666 }
 0x179   : > { %v659_v59 = vpop.permute.xlu0 %658 }
 0x17d   : > { %v671_v62 = vpop.permute.xlu0 %670 }
 0x17f   : > { %v675_v7 = vpop.permute.xlu1 %674 }
 0x182   : > { %v679_v5 = vpop.permute.xlu0 %678 }
 0x183   : > { %v683_v24 = vpop.permute.xlu1 %682 }
 0x186   : > { %v687_v11 = vpop.permute.xlu0 %686 }
 0x187   : > { %v691_v43 = vpop.permute.xlu1 %690 }
 0x18a   : > { %v695_v38 = vpop.permute.xlu0 %694 }
 0x18e   : > { %v703_v50 = vpop.permute.xlu0 %702 }
 0x20c   : > { %v649_v6 = vpop.f32.mrb[0].mxu1 }
 0x20d   : > { %v3434_v9 = vrot.slane %v649_v6, %v3425_v4  ;;  %v2652_v10 = vpop.f32.mrb[1].mxu1  ;;  %v711_v6 = vpop.permute.xlu0 %710 }
 0x20e   : > { %v3514_v10 = vld [vmem:[%s3431_s16 + $0x38] sm:$0xff] }
 0x20f   : > { %v722_v13 = vadd.f32 %v3434_v9, %v659_v59  ;;  %v721_v15 = vadd.f32 %v3434_v9, %v655_v58  ;;  %v725_v16 = vadd.f32 %v3434_v9, %v671_v62  ;;  %v723_v17 = vadd.f32 %v3434_v9, %v663_v61  ;;  %v699_v59 = vpop.permute.xlu1 %698 }
 0x210   : > { %v727_v18 = vadd.f32 %v3434_v9, %v679_v5  ;;  %v724_v19 = vadd.f32 %v3434_v9, %v667_v0  ;;  %v729_v35 = vadd.f32 %v3434_v9, %v687_v11  ;;  %v726_v36 = vadd.f32 %v3434_v9, %v675_v7  ;;  %v3511_v7 = vld [vmem:[%s3431_s16 + $0x50] sm:$0xff] }
 0x211   : > { %v738_v20 = vmul.f32 0.2, %v722_v13  ;;  %v737_v21 = vmul.f32 0.2, %v721_v15  ;;  %v741_v22 = vmul.f32 0.2, %v725_v16  ;;  %v731_v53 = vadd.f32 %v3434_v9, %v695_v38 }
 0x212   : > { %v739_v23 = vmul.f32 0.2, %v723_v17  ;;  %v743_v32 = vmul.f32 0.2, %v727_v18  ;;  %v740_v34 = vmul.f32 0.2, %v724_v19  ;;  %v728_v54 = vadd.f32 %v3434_v9, %v683_v24 }
 0x213   : > { %v754_v25 = vmax.f32 %v722_v13, %v738_v20  ;;  %v753_v26 = vmax.f32 %v721_v15, %v737_v21  ;;  %v757_v41 = vmax.f32 %v725_v16, %v741_v22  ;;  %v745_v47 = vmul.f32 0.2, %v729_v35  ;;  %v3531_v22 = vld [vmem:[%s3431_s16 + $0x60] sm:$0xff] }
 0x214   : > { %v755_v42 = vmax.f32 %v723_v17, %v739_v23  ;;  %v759_v44 = vmax.f32 %v727_v18, %v743_v32  ;;  %v756_v45 = vmax.f32 %v724_v19, %v740_v34  ;;  %v742_v49 = vmul.f32 0.2, %v726_v36  ;;  %v707_v17 = vpop.permute.xlu1 %706  ;;  %v3534_v23 = vld [vmem:[%s3431_s16 + $0x48] sm:$0xff] }
 0x215   : > { %v3466_v39 = vsel %vm337_vm4, %v754_v25, -9e+15  ;;  %v3470_v40 = vsel %vm336_vm5, %v753_v26, -9e+15  ;;  %v3486_v51 = vsel %vm340_vm6, %v757_v41, -9e+15  ;;  %v761_v57 = vmax.f32 %v729_v35, %v745_v47 }
 0x216   : > { %787 = vmax.xlane.f32.xlu1 %v3466_v39  ;;  %785 = vmax.xlane.f32.xlu0 %v3470_v40  ;;  %v3490_v52 = vsel %vm338_vm7, %v755_v42, -9e+15  ;;  %v3500_v55 = vsel %vm342_vm8, %v759_v44, -9e+15  ;;  %v3504_v56 = vsel %vm339_vm9, %v756_v45, -9e+15  ;;  %v758_v58 = vmax.f32 %v726_v36, %v742_v49 }
 0x217   : > { %v747_v61 = vmul.f32 0.2, %v731_v53  ;;  %v744_v62 = vmul.f32 0.2, %v728_v54  ;;  %v733_v0 = vadd.f32 %v3434_v9, %v703_v50  ;;  %v730_v5 = vadd.f32 %v3434_v9, %v691_v43  ;;  %v3550_v41 = vld [vmem:[%s3431_s16 + $0x70] sm:$0xff]  ;;  %v3553_v42 = vld [vmem:[%s3431_s16 + $0x58] sm:$0xff] }
 0x218   : > { %v3518_v11 = vsel %vm344_vm10, %v761_v57, -9e+15  ;;  %v3522_v13 = vsel %vm341_vm11, %v758_v58, -9e+15  ;;  %v735_v15 = vadd.f32 %v3434_v9, %v711_v6  ;;  %v732_v16 = vadd.f32 %v3434_v9, %v699_v59  ;;  %v715_v38 = vpop.permute.xlu1 %714  ;;  %v3583_v59 = vld [vmem:[%s3431_s16 + $0x78] sm:$0xff] }
 0x219   : > { %v763_v18 = vmax.f32 %v731_v53, %v747_v61  ;;  %v760_v19 = vmax.f32 %v728_v54, %v744_v62  ;;  %v749_v20 = vmul.f32 0.2, %v733_v0  ;;  %v746_v21 = vmul.f32 0.2, %v730_v5 }
 0x21a   : > { %793 = vmax.xlane.f32.xlu1 %v3486_v51  ;;  %789 = vmax.xlane.f32.xlu0 %v3490_v52  ;;  %vm346_vm12 = vcmp.gt.f32.partialorder %v3511_v7, 0.0  ;;  %vm4264_vm13 = vcmp.gt.f32.partialorder %v3514_v10, 0.0  ;;  %v751_v24 = vmul.f32 0.2, %v735_v15  ;;  %v748_v25 = vmul.f32 0.2, %v732_v16 }
 0x21b   : > { %v734_v26 = vadd.f32 %v3434_v9, %v707_v17  ;;  %v3539_v32 = vsel %vm346_vm12, %v763_v18, -9e+15  ;;  %v3543_v34 = vsel %vm4264_vm13, %v760_v19, -9e+15  ;;  %v765_v35 = vmax.f32 %v733_v0, %v749_v20 }
 0x21c   : > { %v762_v36 = vmax.f32 %v730_v5, %v746_v21  ;;  %vm348_vm14 = vcmp.gt.f32.partialorder %v3531_v22, 0.0  ;;  %vm4265_vm15 = vcmp.gt.f32.partialorder %v3534_v23, 0.0  ;;  %v736_v44 = vadd.f32 %v3434_v9, %v715_v38  ;;  %v3569_v9 = vld [vmem:[%s3431_s16 + $0x68] sm:$0xff]  ;;  %s2325_s16 = sshll.u32 %s301_s15, 1 }
 0x21d   : > { %v750_v43 = vmul.f32 0.2, %v734_v26  ;;  %v3558_v45 = vsel %vm348_vm14, %v765_v35, -9e+15  ;;  %v767_v49 = vmax.f32 %v735_v15, %v751_v24  ;;  %v764_v50 = vmax.f32 %v732_v16, %v748_v25  ;;  %s303_s18 = scalar_lea.vmem [#allocation3], %s2325_s16 }
 0x21e   : > { %797 = vmax.xlane.f32.xlu1 %v3500_v55  ;;  %791 = vmax.xlane.f32.xlu0 %v3504_v56  ;;  %v3562_v47 = vsel %vm4265_vm15, %v762_v36, -9e+15  ;;  %vm4269_vm1 = vcmp.gt.f32.partialorder %v3550_v41, 0.0  ;;  %vm4266_vm13 = vcmp.gt.f32.partialorder %v3553_v42, 0.0  ;;  %v752_v58 = vmul.f32 0.2, %v736_v44 }
 0x21f   : > { %v3573_v53 = vsel %vm4269_vm1, %v767_v49, -9e+15  ;;  %v3577_v54 = vsel %vm4266_vm13, %v764_v50, -9e+15  ;;  %v766_v57 = vmax.f32 %v734_v26, %v750_v43  ;;  %vm4268_vm15 = vcmp.gt.f32.partialorder %v3569_v9, 0.0 }
 0x220   : > { %v768_v62 = vmax.f32 %v736_v44, %v752_v58  ;;  %vm4267_vm13 = vcmp.gt.f32.partialorder %v3583_v59, 0.0 }
 0x221   : > { %v3587_v61 = vsel %vm4268_vm15, %v766_v57, -9e+15 }
 0x222   : > { %801 = vmax.xlane.f32.xlu1 %v3518_v11  ;;  %795 = vmax.xlane.f32.xlu0 %v3522_v13  ;;  %v3593_v0 = vsel %vm4267_vm13, %v768_v62, -9e+15 }
 0x226   : > { %805 = vmax.xlane.f32.xlu1 %v3539_v32  ;;  %799 = vmax.xlane.f32.xlu0 %v3543_v34 }
 0x22a   : > { %809 = vmax.xlane.f32.xlu1 %v3558_v45  ;;  %803 = vmax.xlane.f32.xlu0 %v3562_v47 }
 0x22e   : > { %813 = vmax.xlane.f32.xlu1 %v3573_v53  ;;  %807 = vmax.xlane.f32.xlu0 %v3577_v54 }
 0x232   : > { %811 = vmax.xlane.f32.xlu0 %v3587_v61 }
 0x236   : > { %815 = vmax.xlane.f32.xlu0 %v3593_v0 }
 0x2a3   : > { %v788_v5 = vpop.xlane.xlu1 %787  ;;  %v786_v6 = vpop.xlane.xlu0 %785 }
 0x2a4   : > { %v818_v15 = vsub.f32 %v3466_v39, %v788_v5  ;;  %v817_v16 = vsub.f32 %v3470_v40, %v786_v6 }
 0x2a6   : > { %v835_v17 = vmul.f32 1.442695, %v818_v15  ;;  %v833_v18 = vmul.f32 1.442695, %v817_v16 }
 0x2a7   : > { %v794_v19 = vpop.xlane.xlu1 %793  ;;  %v790_v20 = vpop.xlane.xlu0 %789 }
 0x2a8   : > { %2960 = vpow2.f32 %v835_v17  ;;  %v821_v21 = vsub.f32 %v3486_v51, %v794_v19  ;;  %v819_v24 = vsub.f32 %v3490_v52, %v790_v20 }
 0x2a9   : > { %2962 = vpow2.f32 %v833_v18 }
 0x2aa   : > { %v837_v25 = vmul.f32 1.442695, %v819_v24  ;;  %v841_v36 = vmul.f32 1.442695, %v821_v21 }
 0x2ab   : > { %v798_v26 = vpop.xlane.xlu1 %797  ;;  %v792_v35 = vpop.xlane.xlu0 %791 }
 0x2ac   : > { %v823_v38 = vsub.f32 %v3500_v55, %v798_v26  ;;  %v820_v39 = vsub.f32 %v3504_v56, %v792_v35  ;;  %2964 = vpow2.f32 %v837_v25 }
 0x2ad   : > { %2966 = vpow2.f32 %v841_v36 }
 0x2ae   : > { %v839_v40 = vmul.f32 1.442695, %v820_v39  ;;  %v845_v49 = vmul.f32 1.442695, %v823_v38 }
 0x2af   : > { %v802_v43 = vpop.xlane.xlu1 %801  ;;  %v796_v44 = vpop.xlane.xlu0 %795 }
 0x2b0   : > { %v825_v50 = vsub.f32 %v3518_v11, %v802_v43  ;;  %v822_v51 = vsub.f32 %v3522_v13, %v796_v44  ;;  %2968 = vpow2.f32 %v839_v40 }
 0x2b1   : > { %2970 = vpow2.f32 %v845_v49 }
 0x2b2   : > { %v3604_v52 = vpop.eup %2960  ;;  %v843_v57 = vmul.f32 1.442695, %v822_v51  ;;  %v849_v56 = vmul.f32 1.442695, %v825_v50 }
 0x2b3   : > { %v3606_v58 = vpop.eup %2962  ;;  %v806_v62 = vpop.xlane.xlu1 %805  ;;  %867 = vadd.xlane.f32.xlu0 %v3604_v52 }
 0x2b4   : > { %v800_v55 = vpop.xlane.xlu0 %799  ;;  %v827_v5 = vsub.f32 %v3539_v32, %v806_v62  ;;  %865 = vadd.xlane.f32.xlu1 %v3606_v58  ;;  %2972 = vpow2.f32 %v843_v57 }
 0x2b5   : > { %v824_v11 = vsub.f32 %v3543_v34, %v800_v55  ;;  %2974 = vpow2.f32 %v849_v56 }
 0x2b6   : > { %v3612_v6 = vpop.eup %2964  ;;  %v853_v17 = vmul.f32 1.442695, %v827_v5 }
 0x2b7   : > { %v847_v13 = vmul.f32 1.442695, %v824_v11  ;;  %v810_v15 = vpop.xlane.xlu1 %809  ;;  %v3617_v32 = vpop.eup %2966 }
 0x2b8   : > { %v804_v16 = vpop.xlane.xlu0 %803  ;;  %v829_v18 = vsub.f32 %v3558_v45, %v810_v15  ;;  %869 = vadd.xlane.f32.xlu1 %v3612_v6 }
 0x2b9   : > { %v826_v19 = vsub.f32 %v3562_v47, %v804_v16  ;;  %2976 = vpow2.f32 %v847_v13 }
 0x2ba   : > { %v3619_v21 = vpop.eup %2968  ;;  %2978 = vpow2.f32 %v853_v17  ;;  %v857_v25 = vmul.f32 1.442695, %v829_v18 }
 0x2bb   : > { %v851_v20 = vmul.f32 1.442695, %v826_v19  ;;  %v814_v34 = vpop.xlane.xlu1 %813  ;;  %871 = vadd.xlane.f32.xlu0 %v3619_v21  ;;  %v3625_v47 = vpop.eup %2970 }
 0x2bc   : > { %v808_v24 = vpop.xlane.xlu0 %807  ;;  %873 = vadd.xlane.f32.xlu1 %v3617_v32  ;;  %v831_v26 = vsub.f32 %v3573_v53, %v814_v34 }
 0x2bd   : > { %v828_v45 = vsub.f32 %v3577_v54, %v808_v24  ;;  %2980 = vpow2.f32 %v851_v20 }
 0x2be   : > { %v3627_v36 = vpop.eup %2972  ;;  %2982 = vpow2.f32 %v857_v25  ;;  %v861_v40 = vmul.f32 1.442695, %v831_v26 }
 0x2bf   : > { %v855_v35 = vmul.f32 1.442695, %v828_v45  ;;  %875 = vadd.xlane.f32.xlu0 %v3627_v36  ;;  %v3632_v43 = vpop.eup %2974 }
 0x2c0   : > { %v812_v38 = vpop.xlane.xlu0 %811  ;;  %877 = vadd.xlane.f32.xlu1 %v3625_v47 }
 0x2c1   : > { %v830_v39 = vsub.f32 %v3587_v61, %v812_v38  ;;  %2984 = vpow2.f32 %v855_v35 }
 0x2c3   : > { %v859_v54 = vmul.f32 1.442695, %v830_v39  ;;  %v3634_v44 = vpop.eup %2976 }
 0x2c4   : > { %v816_v53 = vpop.xlane.xlu0 %815  ;;  %881 = vadd.xlane.f32.xlu1 %v3632_v43  ;;  %879 = vadd.xlane.f32.xlu0 %v3634_v44  ;;  %v3639_v50 = vpop.eup %2978 }
 0x2c5   : > { %2986 = vpow2.f32 %v859_v54  ;;  %v832_v49 = vsub.f32 %v3593_v0, %v816_v53 }
 0x2c6   : > { %2988 = vpow2.f32 %v861_v40 }
 0x2c7   : > { %v863_v51 = vmul.f32 1.442695, %v832_v49  ;;  %v3641_v61 = vpop.eup %2980 }
 0x2c8   : > { %885 = vadd.xlane.f32.xlu1 %v3639_v50  ;;  %883 = vadd.xlane.f32.xlu0 %v3641_v61  ;;  %v3645_v57 = vpop.eup %2982 }
 0x2c9   : > { %2990 = vpow2.f32 %v863_v51 }
 0x2cb   : > { %v3647_v62 = vpop.eup %2984 }
 0x2cc   : > { %889 = vadd.xlane.f32.xlu1 %v3645_v57  ;;  %887 = vadd.xlane.f32.xlu0 %v3647_v62 }
 0x2cf   : > { %v3651_v0 = vpop.eup %2986 }
 0x2d0   : > { %v3653_v55 = vpop.eup %2988  ;;  %891 = vadd.xlane.f32.xlu0 %v3651_v0 }
 0x2d1   : > { %893 = vadd.xlane.f32.xlu1 %v3653_v55 }
 0x2d3   : > { %v3657_v56 = vpop.eup %2990 }
 0x2d4   : > { %895 = vadd.xlane.f32.xlu0 %v3657_v56 }
 0x340   : > { %v868_v5 = vpop.xlane.xlu0 %867 }
 0x341   : > { %v866_v11 = vpop.xlane.xlu1 %865  ;;  %2992 = vrcp.f32 %v868_v5 }
 0x342   : > { %2994 = vrcp.f32 %v866_v11 }
 0x345   : > { %v870_v13 = vpop.xlane.xlu1 %869 }
 0x346   : > { %2996 = vrcp.f32 %v870_v13 }
 0x348   : > { %v872_v16 = vpop.xlane.xlu0 %871 }
 0x349   : > { %v874_v15 = vpop.xlane.xlu1 %873  ;;  %2998 = vrcp.f32 %v872_v16 }
 0x34a   : > { %3000 = vrcp.f32 %v874_v15 }
 0x34b   : > { %v2993_v17 = vpop.eup %2992 }
 0x34c   : > { %v2995_v18 = vpop.eup %2994  ;;  %v914_v19 = vmul.f32 %v2993_v17, %v3604_v52  ;;  %v876_v34 = vpop.xlane.xlu0 %875 }
 0x34d   : > { %v878_v20 = vpop.xlane.xlu1 %877  ;;  %v913_v24 = vmul.f32 %v2995_v18, %v3606_v58  ;;  %3002 = vrcp.f32 %v876_v34 }
 0x34e   : > { %3004 = vrcp.f32 %v878_v20 }
 0x34f   : > { %v929_v25 = vpack.c.bf16 %v914_v19, %v913_v24 }
 0x350   : > { %v2997_v35 = vpop.eup %2996 }
 0x351   : > { %v882_v45 = vpop.xlane.xlu1 %881  ;;  %2669 = vmatprep.mubr.bf16.mxu0 %v929_v25  ;;  %v880_v26 = vpop.xlane.xlu0 %879  ;;  %v915_v54 = vmul.f32 %v2997_v35, %v3612_v6 }
 0x352   : > { %3006 = vrcp.f32 %v880_v26 }
 0x353   : > { %v2999_v38 = vpop.eup %2998  ;;  %3008 = vrcp.f32 %v882_v45 }
 0x354   : > { %v916_v52 = vmul.f32 %v2999_v38, %v3619_v21  ;;  %v3001_v53 = vpop.eup %3000 }
 0x355   : > { %v886_v39 = vpop.xlane.xlu1 %885  ;;  %v884_v40 = vpop.xlane.xlu0 %883  ;;  %v917_v11 = vmul.f32 %v3001_v53, %v3617_v32 }
 0x356   : > { %3010 = vrcp.f32 %v884_v40  ;;  %v930_v49 = vpack.c.bf16 %v916_v52, %v915_v54 }
 0x357   : > { %v3003_v58 = vpop.eup %3002  ;;  %3012 = vrcp.f32 %v886_v39  ;;  %v1139_v39 = vld [vmem:[%s3683_s19 + $0x8] sm:$0xff] }
 0x358   : > { %2670 = vmatmul.mubr.bf16.vlgmr.msra.gmra.mrb[16].mxu0 %v930_v49  ;;  %v918_v13 = vmul.f32 %v3003_v58, %v3627_v36  ;;  %v3005_v15 = vpop.eup %3004  ;;  %v1142_v49 = vld [vmem:[%s3683_s19 + $0x20] sm:$0xff]  ;;  %v1143_v58 = vld [vmem:[%s3683_s19 + $0x28] sm:$0xff] }
 0x359   : > { %v890_v51 = vpop.xlane.xlu1 %889  ;;  %v888_v5 = vpop.xlane.xlu0 %887  ;;  %2686 = vmatpush3.bf16.msra.mxu0 %v3322_v1  ;;  %v919_v18 = vmul.f32 %v3005_v15, %v3625_v47 }
 0x35a   : > { %3014 = vrcp.f32 %v888_v5  ;;  %v931_v16 = vpack.c.bf16 %v918_v13, %v917_v11  ;;  %2687 = vmatprep.subr.bf16.mxu0 %v3328_v2  ;;  %v1145_v5 = vld [vmem:[%s3683_s19 + $0x38] sm:$0xff]  ;;  %v1146_v11 = vld [vmem:[%s3683_s19 + $0x40] sm:$0xff]  ;;  %v1147_v13 = vld [vmem:[%s3683_s19 + $0x48] sm:$0xff] }
 0x35b   : > { %3016 = vrcp.f32 %v890_v51  ;;  %v1156_v51 = vpack.c.bf16 %v1143_v58, %v1142_v49 }
 0x35c   : > { %v3007_v6 = vpop.eup %3006  ;;  %2673 = vmatprep.mubr.bf16.mxu0 %v931_v16  ;;  %v1158_v16 = vpack.c.bf16 %v1147_v13, %v1146_v11 }
 0x35d   : > { %v892_v17 = vpop.xlane.xlu0 %891  ;;  %v920_v19 = vmul.f32 %v3007_v6, %v3634_v44  ;;  %v3009_v20 = vpop.eup %3008  ;;  %2688 = vmatpush3.bf16.msra.mxu0 %v3328_v2  ;;  %v1148_v6 = vld [vmem:[%s3683_s19 + $0x50] sm:$0xff] }
 0x35e   : > { %v894_v21 = vpop.xlane.xlu1 %893  ;;  %3018 = vrcp.f32 %v892_v17  ;;  %2689 = vmatprep.subr.bf16.mxu0 %v3337_v3  ;;  %v921_v34 = vmul.f32 %v3009_v20, %v3632_v43  ;;  %v1150_v17 = vld [vmem:[%s3683_s19 + $0x60] sm:$0xff] }
 0x35f   : > { %3020 = vrcp.f32 %v894_v21  ;;  %v932_v32 = vpack.c.bf16 %v920_v19, %v919_v18  ;;  %v1149_v21 = vld [vmem:[%s3683_s19 + $0x58] sm:$0xff]  ;;  %v1151_v18 = vld [vmem:[%s3683_s19 + $0x68] sm:$0xff] }
 0x360   : > { %v3011_v1 = vpop.eup %3010  ;;  %v1159_v19 = vpack.c.bf16 %v1149_v21, %v1148_v6  ;;  %v1160_v20 = vpack.c.bf16 %v1151_v18, %v1150_v17 }
 0x361   : > { %v896_v36 = vpop.xlane.xlu0 %895  ;;  %2674 = vmatmul.mubr.bf16.gmra.mrb[20].mxu0 %v932_v32  ;;  %v922_v24 = vmul.f32 %v3011_v1, %v3641_v61  ;;  %v3013_v47 = vpop.eup %3012  ;;  %v1152_v32 = vld [vmem:[%s3683_s19 + $0x70] sm:$0xff]  ;;  %v1153_v1 = vld [vmem:[%s3683_s19 + $0x78] sm:$0xff] }
 0x362   : > { %3022 = vrcp.f32 %v896_v36  ;;  %2690 = vmatpush3.bf16.msra.mxu0 %v3337_v3  ;;  %v923_v25 = vmul.f32 %v3013_v47, %v3639_v50  ;;  %v1161_v36 = vpack.c.bf16 %v1153_v1, %v1152_v32 }
 0x363   : > { %v933_v44 = vpack.c.bf16 %v922_v24, %v921_v34  ;;  %2691 = vmatprep.subr.bf16.mxu0 %v3354_v8 }
 0x364   : > { %v3015_v2 = vpop.eup %3014 }
 0x365   : > { %2677 = vmatprep.mubr.bf16.mxu0 %v933_v44  ;;  %v924_v45 = vmul.f32 %v3015_v2, %v3647_v62  ;;  %v3017_v26 = vpop.eup %3016  ;;  %v1138_v62 = vld [vmem:[%s3683_s19] sm:$0xff] }
 0x366   : > { %2692 = vmatpush3.bf16.msra.mxu0 %v3354_v8  ;;  %v925_v43 = vmul.f32 %v3017_v26, %v3645_v57  ;;  %v1154_v53 = vpack.c.bf16 %v1139_v39, %v1138_v62  ;;  %v1140_v57 = vld [vmem:[%s3683_s19 + $0x10] sm:$0xff] }
 0x367   : > { %v934_v35 = vpack.c.bf16 %v924_v45, %v923_v25 }
 0x368   : > { %v3019_v38 = vpop.eup %3018 }
 0x369   : > { %v3021_v3 = vpop.eup %3020  ;;  %2678 = vmatmul.mubr.bf16.gmra.mrb[24].mxu0 %v934_v35  ;;  %v926_v50 = vmul.f32 %v3019_v38, %v3651_v0  ;;  %v1141_v0 = vld [vmem:[%s3683_s19 + $0x18] sm:$0xff] }
 0x36a   : > { %v927_v40 = vmul.f32 %v3021_v3, %v3653_v55  ;;  %v1155_v55 = vpack.c.bf16 %v1141_v0, %v1140_v57 }
 0x36b   : > { %v935_v61 = vpack.c.bf16 %v926_v50, %v925_v43 }
 0x36c   : > { %v3023_v8 = vpop.eup %3022 }
 0x36d   : > { %v928_v54 = vmul.f32 %v3023_v8, %v3657_v56  ;;  %2681 = vmatprep.mubr.bf16.mxu0 %v935_v61  ;;  %v1144_v56 = vld [vmem:[%s3683_s19 + $0x30] sm:$0xff]  ;;  %s2238_s19 = sshll.u32 %s303_s18, 4  ;;  %s4215_s19 = int_to_ptr.vmem [resolvable:$true] %s2238_s19 }
 0x36e   : > { %v1157_v15 = vpack.c.bf16 %v1145_v5, %v1144_v56  ;;  %s3157_s24 = scalar_lea.vmem %s4215_s19, 32  ;;  %p3164_p0 = scmp.lt.s32.totalorder %s4215_s19, %s3162_s25 }
 0x36f   : > { %v936_v52 = vpack.c.bf16 %v928_v54, %v927_v40  ;;  %p3158_p11 = scmp.ne.s32.totalorder %s4215_s19, %s3157_s24  ;;  %p3165_p1 = scmp.lt.s32.totalorder %s3163_s30, %s3157_s24 }
 0x371   : > { %2682 = vmatmul.mubr.bf16.gmra.mrb[28].mxu0 %v936_v52  ;;  %p3159_p12 = pnand %p3158_p11, %p3309_p5  ;;  %p3166_p2 = por %p3165_p1, %p3164_p0 }
 0x372   : > { %2693 = vmatprep.mubr.msk.bf16.mxu0 %vm408_vm0, %v1154_v53 }
 0x373   : > { %p3160_p13 = pneg %p3159_p12 }
 0x375   : > { %p3167_p3 = pnand %p3166_p2, %p3160_p13 }
 0x379   : > { %2694 = vmatmul.mubr.msk.bf16.vlgmr.msra.gmra.mrb[32].mxu0 %vm408_vm0, %v1155_v55 }
 0x37a   : > { %2697 = vmatprep.mubr.msk.bf16.mxu0 %vm408_vm0, %v1156_v51 }
 0x381   : > { %2698 = vmatmul.mubr.msk.bf16.gmra.mrb[36].mxu0 %vm408_vm0, %v1157_v15 }
 0x382   : > { %2701 = vmatprep.mubr.msk.bf16.mxu0 %vm408_vm0, %v1158_v16 }
 0x389   : > { %2702 = vmatmul.mubr.msk.bf16.gmra.mrb[40].mxu0 %vm408_vm0, %v1159_v19 }
 0x38a   : > { %2705 = vmatprep.mubr.msk.bf16.mxu0 %vm408_vm0, %v1160_v20 }
 0x391   : > { %2706 = vmatmul.mubr.msk.bf16.gmra.mrb[44].mxu0 %vm408_vm0, %v1161_v36 }
 0x42b   : > { %v2671_v34 = vpop.f32.mrb[16].mxu0 }
 0x42c   : > { %v1060_v24 = vmin.f32 %v2671_v34, 0.0  ;;  %v979_v47 = vpop.f32.mrb[17].mxu0  ;;  %vm1044_vm0 = vcmp.gt.f32.partialorder %v2671_v34, 0.0 }
 0x42d   : > { %v1058_v44 = vmin.f32 %v979_v47, 0.0  ;;  %v2672_v2 = vpop.f32.mrb[18].mxu0  ;;  %vm1042_vm13 = vcmp.gt.f32.partialorder %v979_v47, 0.0 }
 0x42e   : > { %v1078_v25 = vmul.f32 1.442695, %v1060_v24  ;;  %v1061_v45 = vmin.f32 %v2672_v2, 0.0  ;;  %v982_v26 = vpop.f32.mrb[19].mxu0  ;;  %vm1045_vm15 = vcmp.gt.f32.partialorder %v2672_v2, 0.0 }
 0x42f   : > { %v1074_v35 = vmul.f32 1.442695, %v1058_v44  ;;  %v1059_v38 = vmin.f32 %v982_v26, 0.0  ;;  %vm1043_vm1 = vcmp.gt.f32.partialorder %v982_v26, 0.0 }
 0x430   : > { %3024 = vpow2.f32 %v1078_v25  ;;  %v1080_v3 = vmul.f32 1.442695, %v1061_v45 }
 0x431   : > { %3026 = vpow2.f32 %v1074_v35  ;;  %v1076_v43 = vmul.f32 1.442695, %v1059_v38 }
 0x432   : > { %3028 = vpow2.f32 %v1080_v3 }
 0x433   : > { %3030 = vpow2.f32 %v1076_v43 }
 0x434   : > { %v3713_v50 = vpop.f32.mrb[20].mxu0 }
 0x435   : > { %v1064_v8 = vmin.f32 %v3713_v50, 0.0  ;;  %v3716_v61 = vpop.f32.mrb[21].mxu0 }
 0x436   : > { %v1062_v62 = vmin.f32 %v3716_v61, 0.0  ;;  %v3719_v39 = vpop.f32.mrb[22].mxu0 }
 0x437   : > { %v1086_v40 = vmul.f32 1.442695, %v1064_v8  ;;  %v1065_v54 = vmin.f32 %v3719_v39, 0.0  ;;  %v3722_v52 = vpop.f32.mrb[23].mxu0 }
 0x438   : > { %v1082_v53 = vmul.f32 1.442695, %v1062_v62  ;;  %v1063_v57 = vmin.f32 %v3722_v52, 0.0 }
 0x439   : > { %3032 = vpow2.f32 %v1086_v40  ;;  %v1088_v0 = vmul.f32 1.442695, %v1065_v54 }
 0x43a   : > { %3034 = vpow2.f32 %v1082_v53  ;;  %v1084_v49 = vmul.f32 1.442695, %v1063_v57  ;;  %v3025_v58 = vpop.eup %3024 }
 0x43b   : > { %3036 = vpow2.f32 %v1088_v0  ;;  %v3027_v55 = vpop.eup %3026  ;;  %v2363_v51 = vadd.f32 -1.0, %v3025_v58 }
 0x43c   : > { %3038 = vpow2.f32 %v1084_v49  ;;  %v3725_v56 = vpop.f32.mrb[24].mxu0  ;;  %v3029_v5 = vpop.eup %3028  ;;  %v2361_v11 = vadd.f32 -1.0, %v3027_v55 }
 0x43d   : > { %v1068_v13 = vmin.f32 %v3725_v56, 0.0  ;;  %v3728_v15 = vpop.f32.mrb[25].mxu0  ;;  %v3031_v16 = vpop.eup %3030  ;;  %v2364_v6 = vadd.f32 -1.0, %v3029_v5  ;;  %v3737_v1 = vsel %vm1044_vm0, %v2671_v34, %v2363_v51  ;;  %vm1047_vm0 = vcmp.gt.f32.partialorder %v3722_v52, 0.0 }
 0x43e   : > { %v1066_v21 = vmin.f32 %v3728_v15, 0.0  ;;  %v3731_v17 = vpop.f32.mrb[26].mxu0  ;;  %v3733_v18 = vsel %vm1042_vm13, %v979_v47, %v2361_v11  ;;  %v2362_v19 = vadd.f32 -1.0, %v3031_v16  ;;  %vm1048_vm13 = vcmp.gt.f32.partialorder %v3713_v50, 0.0 }
 0x43f   : > { %v1094_v20 = vmul.f32 1.442695, %v1068_v13  ;;  %v3735_v32 = vpop.f32.mrb[27].mxu0  ;;  %v3739_v36 = vsel %vm1045_vm15, %v2672_v2, %v2364_v6  ;;  %v1886_v44 = vsel %vm531_vm2, %v3733_v18, 0.0  ;;  %v1069_v2 = vmin.f32 %v3731_v17, 0.0 }
 0x440   : > { %v1090_v24 = vmul.f32 1.442695, %v1066_v21  ;;  %v3745_v45 = vsel %vm1043_vm1, %v982_v26, %v2362_v19  ;;  %vm1046_vm15 = vcmp.gt.f32.partialorder %v3716_v61, 0.0  ;;  %v1067_v3 = vmin.f32 %v3735_v32, 0.0 }
 0x441   : > { %3040 = vpow2.f32 %v1094_v20  ;;  %v1887_v47 = vsel %vm531_vm2, %v3745_v45, 0.0  ;;  %v1889_v43 = vsel %vm531_vm2, %v3737_v1, 0.0  ;;  %vm1049_vm1 = vcmp.gt.f32.partialorder %v3719_v39, 0.0 }
 0x442   : > { %3042 = vpow2.f32 %v1090_v24  ;;  %v1888_v38 = vadd.f32 %v1887_v47, %v1886_v44  ;;  %v1096_v62 = vmul.f32 1.442695, %v1069_v2  ;;  %v1092_v0 = vmul.f32 1.442695, %v1067_v3 }
 0x443   : > { %v3033_v35 = vpop.eup %3032  ;;  %v1891_v55 = vsel %vm531_vm2, %v3739_v36, 0.0 }
 0x444   : > { %v3035_v26 = vpop.eup %3034  ;;  %v2367_v8 = vadd.f32 -1.0, %v3033_v35  ;;  %v3758_v40 = vpop.f32.mrb[28].mxu0  ;;  %v1890_v53 = vadd.f32 %v1889_v43, %v1888_v38  ;;  %3044 = vpow2.f32 %v1096_v62 }
 0x445   : > { %v3037_v54 = vpop.eup %3036  ;;  %v2365_v57 = vadd.f32 -1.0, %v3035_v26  ;;  %v3761_v49 = vpop.f32.mrb[29].mxu0  ;;  %v1072_v5 = vmin.f32 %v3758_v40, 0.0  ;;  %3046 = vpow2.f32 %v1092_v0 }
 0x446   : > { %v3039_v58 = vpop.eup %3038  ;;  %v2368_v51 = vadd.f32 -1.0, %v3037_v54  ;;  %v3766_v11 = vpop.f32.mrb[30].mxu0  ;;  %v3771_v13 = vsel %vm1048_vm13, %v3713_v50, %v2367_v8  ;;  %v1892_v6 = vadd.f32 %v1891_v55, %v1890_v53  ;;  %v1070_v3 = vmin.f32 %v3761_v49, 0.0 }
 0x447   : > { %v3776_v16 = vsel %vm1046_vm15, %v3716_v61, %v2365_v57  ;;  %v2366_v21 = vadd.f32 -1.0, %v3039_v58  ;;  %v3778_v19 = vpop.f32.mrb[31].mxu0  ;;  %v1102_v50 = vmul.f32 1.442695, %v1072_v5  ;;  %v1073_v26 = vmin.f32 %v3766_v11, 0.0 }
 0x448   : > { %v1893_v20 = vsel %vm531_vm2, %v3776_v16, 0.0  ;;  %v3785_v24 = vsel %vm1049_vm1, %v3719_v39, %v2368_v51  ;;  %v1897_v8 = vsel %vm531_vm2, %v3771_v13, 0.0  ;;  %v1098_v57 = vmul.f32 1.442695, %v1070_v3 }
 0x449   : > { %v1894_v44 = vadd.f32 %v1893_v20, %v1892_v6  ;;  %v3792_v61 = vsel %vm1047_vm0, %v3722_v52, %v2366_v21  ;;  %3048 = vpow2.f32 %v1102_v50  ;;  %v1071_v52 = vmin.f32 %v3778_v19, 0.0 }
 0x44a   : > { %v1895_v2 = vsel %vm531_vm2, %v3792_v61, 0.0  ;;  %v1104_v0 = vmul.f32 1.442695, %v1073_v26  ;;  %v1899_v55 = vsel %vm531_vm2, %v3785_v24, 0.0  ;;  %vm1050_vm13 = vcmp.gt.f32.partialorder %v3728_v15, 0.0 }
 0x44b   : > { %v3041_v38 = vpop.eup %3040  ;;  %v1896_v39 = vadd.f32 %v1895_v2, %v1894_v44  ;;  %v1100_v51 = vmul.f32 1.442695, %v1071_v52  ;;  %3050 = vpow2.f32 %v1098_v57  ;;  %vm1052_vm15 = vcmp.gt.f32.partialorder %v3725_v56, 0.0 }
 0x44c   : > { %v3043_v43 = vpop.eup %3042  ;;  %v2695_v62 = vpop.f32.mrb[32].mxu0  ;;  %v2371_v6 = vadd.f32 -1.0, %v3041_v38  ;;  %3052 = vpow2.f32 %v1104_v0  ;;  %vm1053_vm1 = vcmp.gt.f32.partialorder %v3731_v17, 0.0  ;;  %vm1051_vm0 = vcmp.gt.f32.partialorder %v3735_v32, 0.0 }
 0x44d   : > { %v1898_v54 = vadd.f32 %v1897_v8, %v1896_v39  ;;  %v2369_v53 = vadd.f32 -1.0, %v3043_v43  ;;  %1410 = vperm.xlu1 %2953, %v2695_v62   ;;  %v1220_v58 = vpop.f32.mrb[33].mxu0  ;;  %3054 = vpow2.f32 %v1100_v51 }
 0x44e   : > { %v2696_v5 = vpop.f32.mrb[34].mxu0  ;;  %v3045_v44 = vpop.eup %3044 }
 0x44f   : > { %v3807_v21 = vsel %vm1050_vm13, %v3728_v15, %v2369_v53  ;;  %v1900_v20 = vadd.f32 %v1899_v55, %v1898_v54  ;;  %v1223_v50 = vpop.f32.mrb[35].mxu0  ;;  %v2824_v39 = vpack.c.bf16 %v2696_v5, %v2695_v62  ;;  %v2372_v43 = vadd.f32 -1.0, %v3045_v44  ;;  %v3047_v8 = vpop.eup %3046 }
 0x450   : > { %v1901_v2 = vsel %vm531_vm2, %v3807_v21, 0.0  ;;  %v2820_v3 = vpack.c.bf16 %v1223_v50, %v1220_v58  ;;  %1406 = vperm.xlu0 %2952, %v1223_v50   ;;  %v3816_v15 = vsel %vm1052_vm15, %v3725_v56, %v2371_v6  ;;  %v2370_v52 = vadd.f32 -1.0, %v3047_v8 }
 0x451   : > { %v1902_v26 = vadd.f32 %v1901_v2, %v1900_v20  ;;  %1402 = vperm.xlu1 %2953, %v1220_v58   ;;  %v3819_v38 = vsel %vm1053_vm1, %v3731_v17, %v2372_v43  ;;  %vm1054_vm13 = vcmp.gt.f32.partialorder %v3761_v49, 0.0  ;;  %vm1056_vm15 = vcmp.gt.f32.partialorder %v3758_v40, 0.0 }
 0x452   : > { %2822 = vmatpush3.bf16.xpose.msk.msra.mxu1 %vm3386_vm3, %v2820_v3  ;;  %2744 = vmatprep.subr.bf16.mxu0 %v2820_v3  ;;  %v3826_v53 = vsel %vm1051_vm0, %v3735_v32, %v2370_v52  ;;  %v1905_v32 = vsel %vm531_vm2, %v3816_v15, 0.0  ;;  %vm1057_vm1 = vcmp.gt.f32.partialorder %v3766_v11, 0.0  ;;  %vm1055_vm0 = vcmp.gt.f32.partialorder %v3778_v19, 0.0 }
 0x453   : > { %2745 = vmatpush3.bf16.msra.mxu0 %v2820_v3  ;;  %2823 = vmatprep.subr.bf16.mxu1 %v3222_v30  ;;  %v3049_v57 = vpop.eup %3048  ;;  %v1903_v17 = vsel %vm531_vm2, %v3826_v53, 0.0  ;;  %v1907_v3 = vsel %vm531_vm2, %v3819_v38, 0.0 }
 0x454   : > { %v2699_v54 = vpop.f32.mrb[36].mxu0  ;;  %2746 = vmatprep.subr.bf16.mxu0 %v2824_v39  ;;  %v1904_v55 = vadd.f32 %v1903_v17, %v1902_v26  ;;  %v2375_v44 = vadd.f32 -1.0, %v3049_v57 }
 0x455   : > { %1414 = vperm.xlu1 %2953, %v2696_v5   ;;  %1426 = vperm.xlu0 %2952, %v2699_v54   ;;  %v1236_v56 = vpop.f32.mrb[37].mxu0  ;;  %v3051_v5 = vpop.eup %3050 }
 0x456   : > { %v2700_v58 = vpop.f32.mrb[38].mxu0  ;;  %v1906_v50 = vadd.f32 %v1905_v32, %v1904_v55  ;;  %v3053_v2 = vpop.eup %3052  ;;  %v2373_v43 = vadd.f32 -1.0, %v3051_v5 }
 0x457   : > { %v3832_v51 = vpack.c.bf16 %v2700_v58, %v2699_v54  ;;  %v1239_v6 = vpop.f32.mrb[39].mxu0  ;;  %2747 = vmatpush3.bf16.msra.mxu0 %v2824_v39  ;;  %v3055_v26 = vpop.eup %3054  ;;  %v2376_v52 = vadd.f32 -1.0, %v3053_v2 }
 0x458   : > { %v2828_v20 = vpack.c.bf16 %v1239_v6, %v1236_v56  ;;  %v1908_v8 = vadd.f32 %v1907_v3, %v1906_v50  ;;  %v3844_v54 = vsel %vm1054_vm13, %v3761_v49, %v2373_v43 }
 0x459   : > { %1418 = vperm.xlu0 %2952, %v1236_v56   ;;  %1422 = vperm.xlu1 %2953, %v1239_v6   ;;  %v2374_v56 = vadd.f32 -1.0, %v3055_v26  ;;  %v1909_v17 = vsel %vm531_vm2, %v3844_v54, 0.0  ;;  %v3854_v55 = vsel %vm1057_vm1, %v3766_v11, %v2376_v52 }
 0x45a   : > { %2826 = vmatpush3.bf16.xpose.msk.msra.mxu1 %vm3386_vm3, %v2824_v39  ;;  %2748 = vmatprep.subr.bf16.mxu0 %v2828_v20  ;;  %v3849_v39 = vsel %vm1056_vm15, %v3758_v40, %v2375_v44  ;;  %v1910_v6 = vadd.f32 %v1909_v17, %v1908_v8  ;;  %v1915_v26 = vsel %vm531_vm2, %v3854_v55, 0.0 }
 0x45b   : > { %2749 = vmatpush3.bf16.msra.mxu0 %v2828_v20  ;;  %2827 = vmatprep.subr.bf16.mxu1 %v3222_v30  ;;  %v3860_v5 = vsel %vm1055_vm0, %v3778_v19, %v2374_v56  ;;  %v1913_v43 = vsel %vm531_vm2, %v3849_v39, 0.0 }
 0x45c   : > { %v2703_v57 = vpop.f32.mrb[40].mxu0  ;;  %2750 = vmatprep.subr.bf16.mxu0 %v3832_v51  ;;  %v1911_v50 = vsel %vm531_vm2, %v3860_v5, 0.0 }
 0x45d   : > { %1430 = vperm.xlu1 %2953, %v2700_v58   ;;  %1442 = vperm.xlu0 %2952, %v2703_v57   ;;  %v1252_v49 = vpop.f32.mrb[41].mxu0  ;;  %v1912_v2 = vadd.f32 %v1911_v50, %v1910_v6 }
 0x45e   : > { %v2704_v40 = vpop.f32.mrb[42].mxu0 }
 0x45f   : > { %v2840_v44 = vpack.c.bf16 %v2704_v40, %v2703_v57  ;;  %2751 = vmatpush3.bf16.msra.mxu0 %v3832_v51  ;;  %v1255_v58 = vpop.f32.mrb[43].mxu0  ;;  %v1914_v19 = vadd.f32 %v1913_v43, %v1912_v2 }
 0x460   : > { %v2836_v3 = vpack.c.bf16 %v1255_v58, %v1252_v49 }
 0x461   : > { %1434 = vperm.xlu0 %2952, %v1252_v49   ;;  %1438 = vperm.xlu1 %2953, %v1255_v58   ;;  %v3874_v8 = vadd.f32 %v1915_v26, %v1914_v19 }
 0x462   : > { %2830 = vmatpush3.bf16.xpose.msk.msra.mxu1 %vm3386_vm3, %v2828_v20  ;;  %2752 = vmatprep.subr.bf16.mxu0 %v2836_v3 }
 0x463   : > { %2831 = vmatprep.subr.bf16.mxu1 %v3222_v30  ;;  %2753 = vmatpush3.bf16.msra.mxu0 %v2836_v3 }
 0x464   : > { %v2707_v52 = vpop.f32.mrb[44].mxu0  ;;  %2754 = vmatprep.subr.bf16.mxu0 %v2840_v44 }
 0x465   : > { %1446 = vperm.xlu1 %2953, %v2704_v40   ;;  %1458 = vperm.xlu0 %2952, %v2707_v52   ;;  %v1268_v56 = vpop.f32.mrb[45].mxu0 }
 0x466   : > { %v2708_v57 = vpop.f32.mrb[46].mxu0 }
 0x467   : > { %v2848_v17 = vpack.c.bf16 %v2708_v57, %v2707_v52  ;;  %v1271_v49 = vpop.f32.mrb[47].mxu0  ;;  %2755 = vmatpush3.bf16.msra.mxu0 %v2840_v44 }
 0x468   : > { %v2844_v6 = vpack.c.bf16 %v1271_v49, %v1268_v56 }
 0x469   : > { %1450 = vperm.xlu0 %2952, %v1268_v56   ;;  %1454 = vperm.xlu1 %2953, %v1271_v49  }
 0x46a   : > { %2834 = vmatpush3.bf16.xpose.msk.msra.mxu1 %vm3386_vm3, %v3832_v51  ;;  %2756 = vmatprep.subr.bf16.mxu0 %v2844_v6  ;;  %v3156_v51 = vld [vmem:[%s4259_s4] sm:$0x1] }
 0x46b   : > { %2835 = vmatprep.subr.bf16.mxu1 %v3222_v30  ;;  %2757 = vmatpush3.bf16.msra.mxu0 %v2844_v6 }
 0x46c   : > { %2758 = vmatprep.subr.bf16.mxu0 %v2848_v17 }
 0x46d   : > { %1462 = vperm.xlu1 %2953, %v2708_v57  }
 0x46f   : > { %2759 = vmatpush3.bf16.msra.mxu0 %v2848_v17 }
 0x470   : > { %2851 = vmatprep.subr.bf16.mxu0 %v3222_v30 }
 0x472   : > { %2838 = vmatpush3.bf16.xpose.msk.msra.mxu1 %vm3386_vm3, %v2836_v3 }
 0x473   : > { %2839 = vmatprep.subr.bf16.mxu1 %v3222_v30 }
 0x47a   : > { %2842 = vmatpush3.bf16.xpose.msk.msra.mxu1 %vm3386_vm3, %v2840_v44 }
 0x47b   : > { %2843 = vmatprep.subr.bf16.mxu1 %v3222_v30 }
 0x482   : > { %2846 = vmatpush3.bf16.xpose.msk.msra.mxu1 %vm3386_vm3, %v2844_v6 }
 0x483   : > { %2847 = vmatprep.subr.bf16.mxu1 %v3222_v30 }
 0x48a   : > { %2850 = vmatpush3.bf16.xpose.msk.msra.mxu1 %vm3386_vm3, %v2848_v17 }
 0x491   : > { %2742 = vmatmul.mubr.msk.f32.vlgmr.msra.gmra.mrb[2].mxu1 %vm531_vm2, %v3156_v51 }
 0x4cc   : > { %v1411_v20 = vpop.permute.xlu1 %1410 }
 0x4cf   : > { %v1407_v40 = vpop.permute.xlu0 %1406 }
 0x4d0   : > { %v1403_v50 = vpop.permute.xlu1 %1402 }
 0x4d4   : > { %v1427_v44 = vpop.permute.xlu0 %1426  ;;  %v1415_v58 = vpop.permute.xlu1 %1414 }
 0x4d8   : > { %v1419_v2 = vpop.permute.xlu0 %1418  ;;  %v1423_v3 = vpop.permute.xlu1 %1422 }
 0x4dc   : > { %v1443_v43 = vpop.permute.xlu0 %1442  ;;  %v1431_v56 = vpop.permute.xlu1 %1430 }
 0x4e0   : > { %v1435_v51 = vpop.permute.xlu0 %1434 }
 0x4e4   : > { %v1459_v31 = vpop.permute.xlu0 %1458 }
 0x564   : > { %v1397_v19 = vpop.f32.mrb[2].mxu1 }
 0x565   : > { %v3897_v26 = vrot.slane %v1397_v19, %v3425_v4  ;;  %v2743_v52 = vpop.f32.mrb[3].mxu1 }
 0x567   : > { %v1470_v57 = vadd.f32 %v3897_v26, %v1407_v40  ;;  %v1469_v17 = vadd.f32 %v3897_v26, %v1403_v50  ;;  %v1473_v49 = vadd.f32 %v3897_v26, %v1419_v2  ;;  %v1471_v6 = vadd.f32 %v3897_v26, %v1411_v20  ;;  %v1439_v2 = vpop.permute.xlu1 %1438 }
 0x568   : > { %v1475_v60 = vadd.f32 %v3897_v26, %v1427_v44  ;;  %v1472_v32 = vadd.f32 %v3897_v26, %v1415_v58  ;;  %v1477_v40 = vadd.f32 %v3897_v26, %v1435_v51  ;;  %v1474_v50 = vadd.f32 %v3897_v26, %v1423_v3 }
 0x569   : > { %v1486_v11 = vmul.f32 0.2, %v1470_v57  ;;  %v1485_v62 = vmul.f32 0.2, %v1469_v17  ;;  %v1489_v0 = vmul.f32 0.2, %v1473_v49 }
 0x56a   : > { %v1487_v19 = vmul.f32 0.2, %v1471_v6  ;;  %v1491_v35 = vmul.f32 0.2, %v1475_v60  ;;  %v1488_v25 = vmul.f32 0.2, %v1472_v32 }
 0x56b   : > { %v1502_v47 = vmax.f32 %v1470_v57, %v1486_v11  ;;  %v1501_v52 = vmax.f32 %v1469_v17, %v1485_v62  ;;  %v1505_v58 = vmax.f32 %v1473_v49, %v1489_v0  ;;  %v1493_v57 = vmul.f32 0.2, %v1477_v40 }
 0x56c   : > { %v1503_v34 = vmax.f32 %v1471_v6, %v1487_v19  ;;  %v1507_v62 = vmax.f32 %v1475_v60, %v1491_v35  ;;  %v1504_v11 = vmax.f32 %v1472_v32, %v1488_v25  ;;  %v1490_v3 = vmul.f32 0.2, %v1474_v50  ;;  %v1447_v60 = vpop.permute.xlu1 %1446  ;;  %v1451_v25 = vpop.permute.xlu0 %1450 }
 0x56d   : > { %v3909_v20 = vsel %vm337_vm4, %v1502_v47, -9e+15  ;;  %v3913_v44 = vsel %vm336_vm5, %v1501_v52, -9e+15  ;;  %v3919_v12 = vsel %vm340_vm6, %v1505_v58, -9e+15  ;;  %v1479_v47 = vadd.f32 %v3897_v26, %v1443_v43 }
 0x56e   : > { %1535 = vmax.xlane.f32.xlu1 %v3909_v20  ;;  %1533 = vmax.xlane.f32.xlu0 %v3913_v44  ;;  %v3923_v14 = vsel %vm338_vm7, %v1503_v34, -9e+15  ;;  %v1476_v0 = vadd.f32 %v3897_v26, %v1431_v56  ;;  %v3931_v35 = vsel %vm342_vm8, %v1507_v62, -9e+15  ;;  %v3935_v27 = vsel %vm339_vm9, %v1504_v11, -9e+15 }
 0x56f   : > { %v1509_v28 = vmax.f32 %v1477_v40, %v1493_v57  ;;  %v1506_v34 = vmax.f32 %v1474_v50, %v1490_v3  ;;  %v1495_v32 = vmul.f32 0.2, %v1479_v47  ;;  %v1481_v56 = vadd.f32 %v3897_v26, %v1451_v25 }
 0x570   : > { %v1492_v43 = vmul.f32 0.2, %v1476_v0  ;;  %v1478_v17 = vadd.f32 %v3897_v26, %v1439_v2  ;;  %v1483_v49 = vadd.f32 %v3897_v26, %v1459_v31  ;;  %v1480_v6 = vadd.f32 %v3897_v26, %v1447_v60  ;;  %v1455_v51 = vpop.permute.xlu1 %1454 }
 0x571   : > { %v3943_v29 = vsel %vm344_vm10, %v1509_v28, -9e+15  ;;  %v3947_v33 = vsel %vm341_vm11, %v1506_v34, -9e+15  ;;  %v1511_v19 = vmax.f32 %v1479_v47, %v1495_v32  ;;  %v1497_v40 = vmul.f32 0.2, %v1481_v56 }
 0x572   : > { %1541 = vmax.xlane.f32.xlu1 %v3919_v12  ;;  %1537 = vmax.xlane.f32.xlu0 %v3923_v14  ;;  %v1508_v52 = vmax.f32 %v1476_v0, %v1492_v43  ;;  %v1494_v50 = vmul.f32 0.2, %v1478_v17  ;;  %v1499_v46 = vmul.f32 0.2, %v1483_v49  ;;  %v1496_v2 = vmul.f32 0.2, %v1480_v6 }
 0x573   : > { %v1482_v58 = vadd.f32 %v3897_v26, %v1455_v51  ;;  %v3956_v48 = vsel %vm346_vm12, %v1511_v19, -9e+15  ;;  %vm4276_vm4 = vcmp.gt.f32.partialorder %v3514_v10, 0.0  ;;  %v1513_v62 = vmax.f32 %v1481_v56, %v1497_v40 }
 0x574   : > { %v3960_v31 = vsel %vm4276_vm4, %v1508_v52, -9e+15  ;;  %v1510_v11 = vmax.f32 %v1478_v17, %v1494_v50  ;;  %v1463_v57 = vpop.permute.xlu1 %1462  ;;  %vm4277_vm5 = vcmp.gt.f32.partialorder %v3534_v23, 0.0  ;;  %v1515_v10 = vmax.f32 %v1483_v49, %v1499_v46 }
 0x575   : > { %v1498_v3 = vmul.f32 0.2, %v1482_v58  ;;  %v1484_v47 = vadd.f32 %v3897_v26, %v1463_v57  ;;  %v3967_v0 = vsel %vm348_vm14, %v1513_v62, -9e+15  ;;  %v1512_v60 = vmax.f32 %v1480_v6, %v1496_v2 }
 0x576   : > { %1545 = vmax.xlane.f32.xlu1 %v3931_v35  ;;  %1539 = vmax.xlane.f32.xlu0 %v3935_v27  ;;  %v3971_v7 = vsel %vm4277_vm5, %v1510_v11, -9e+15  ;;  %vm4278_vm6 = vcmp.gt.f32.partialorder %v3550_v41, 0.0  ;;  %vm4279_vm7 = vcmp.gt.f32.partialorder %v3553_v42, 0.0  ;;  %vm4280_vm8 = vcmp.gt.f32.partialorder %v3569_v9, 0.0 }
 0x577   : > { %v3977_v25 = vsel %vm4278_vm6, %v1515_v10, -9e+15  ;;  %v3981_v26 = vsel %vm4279_vm7, %v1512_v60, -9e+15  ;;  %v1514_v22 = vmax.f32 %v1482_v58, %v1498_v3  ;;  %v1500_v28 = vmul.f32 0.2, %v1484_v47 }
 0x578   : > { %vm4281_vm9 = vcmp.gt.f32.partialorder %v3583_v59, 0.0  ;;  %vm4283_vm10 = vmmov 0  }
 0x579   : > { %v3987_v23 = vsel %vm4280_vm8, %v1514_v22, -9e+15  ;;  %v1516_v34 = vmax.f32 %v1484_v47, %v1500_v28 }
 0x57a   : > { %1549 = vmax.xlane.f32.xlu1 %v3943_v29  ;;  %1543 = vmax.xlane.f32.xlu0 %v3947_v33 }
 0x57b   : > { %v3992_v41 = vsel %vm4281_vm9, %v1516_v34, -9e+15 }
 0x57e   : > { %1553 = vmax.xlane.f32.xlu1 %v3956_v48  ;;  %1547 = vmax.xlane.f32.xlu0 %v3960_v31 }
 0x582   : > { %1557 = vmax.xlane.f32.xlu1 %v3967_v0  ;;  %1551 = vmax.xlane.f32.xlu0 %v3971_v7 }
 0x586   : > { %1561 = vmax.xlane.f32.xlu1 %v3977_v25  ;;  %1555 = vmax.xlane.f32.xlu0 %v3981_v26 }
 0x58a   : > { %1559 = vmax.xlane.f32.xlu0 %v3987_v23 }
 0x58e   : > { %1563 = vmax.xlane.f32.xlu0 %v3992_v41 }
 0x5fb   : > { %v1536_v42 = vpop.xlane.xlu1 %1535  ;;  %v1534_v32 = vpop.xlane.xlu0 %1533 }
 0x5fc   : > { %v1566_v43 = vsub.f32 %v3909_v20, %v1536_v42  ;;  %v1565_v56 = vsub.f32 %v3913_v44, %v1534_v32 }
 0x5fe   : > { %v1583_v17 = vmul.f32 1.442695, %v1566_v43  ;;  %v1581_v49 = vmul.f32 1.442695, %v1565_v56 }
 0x5ff   : > { %v1542_v9 = vpop.xlane.xlu1 %1541  ;;  %v1538_v6 = vpop.xlane.xlu0 %1537 }
 0x600   : > { %3056 = vpow2.f32 %v1583_v17  ;;  %v1569_v51 = vsub.f32 %v3919_v12, %v1542_v9  ;;  %v1567_v19 = vsub.f32 %v3923_v14, %v1538_v6 }
 0x601   : > { %3058 = vpow2.f32 %v1581_v49 }
 0x602   : > { %v1585_v59 = vmul.f32 1.442695, %v1567_v19  ;;  %v1589_v50 = vmul.f32 1.442695, %v1569_v51 }
 0x603   : > { %v1546_v52 = vpop.xlane.xlu1 %1545  ;;  %v1540_v40 = vpop.xlane.xlu0 %1539 }
 0x604   : > { %v1571_v46 = vsub.f32 %v3931_v35, %v1546_v52  ;;  %v1568_v20 = vsub.f32 %v3935_v27, %v1540_v40  ;;  %3060 = vpow2.f32 %v1585_v59 }
 0x605   : > { %3062 = vpow2.f32 %v1589_v50 }
 0x606   : > { %v1587_v44 = vmul.f32 1.442695, %v1568_v20  ;;  %v1593_v62 = vmul.f32 1.442695, %v1571_v46 }
 0x607   : > { %v1550_v2 = vpop.xlane.xlu1 %1549  ;;  %v1544_v58 = vpop.xlane.xlu0 %1543 }
 0x608   : > { %v1573_v11 = vsub.f32 %v3943_v29, %v1550_v2  ;;  %v1570_v12 = vsub.f32 %v3947_v33, %v1544_v58  ;;  %3064 = vpow2.f32 %v1587_v44 }
 0x609   : > { %3066 = vpow2.f32 %v1593_v62 }
 0x60a   : > { %v4003_v14 = vpop.eup %3056  ;;  %v1591_v57 = vmul.f32 1.442695, %v1570_v12  ;;  %v1597_v27 = vmul.f32 1.442695, %v1573_v11  ;;  %v1917_v12 = vrot.slane %v3874_v8, 4 }
 0x60b   : > { %v4005_v3 = vpop.eup %3058  ;;  %v1554_v47 = vpop.xlane.xlu1 %1553  ;;  %1615 = vadd.xlane.f32.xlu0 %v4003_v14 }
 0x60c   : > { %v1548_v35 = vpop.xlane.xlu0 %1547  ;;  %v1575_v10 = vsub.f32 %v3956_v48, %v1554_v47  ;;  %1613 = vadd.xlane.f32.xlu1 %v4005_v3  ;;  %3068 = vpow2.f32 %v1591_v57  ;;  %v1918_v57 = vadd.f32 %v1917_v12, %v3874_v8 }
 0x60d   : > { %v1572_v29 = vsub.f32 %v3960_v31, %v1548_v35  ;;  %3070 = vpow2.f32 %v1597_v27 }
 0x60e   : > { %v4011_v60 = vpop.eup %3060  ;;  %v1601_v34 = vmul.f32 1.442695, %v1575_v10  ;;  %v1919_v27 = vrot.slane %v1918_v57, 2 }
 0x60f   : > { %v1595_v33 = vmul.f32 1.442695, %v1572_v29  ;;  %v1558_v22 = vpop.xlane.xlu1 %1557  ;;  %v4016_v48 = vpop.eup %3062 }
 0x610   : > { %v1552_v28 = vpop.xlane.xlu0 %1551  ;;  %v1577_v42 = vsub.f32 %v3967_v0, %v1558_v22  ;;  %1617 = vadd.xlane.f32.xlu1 %v4011_v60  ;;  %v1920_v29 = vadd.f32 %v1919_v27, %v1918_v57 }
 0x611   : > { %v1574_v32 = vsub.f32 %v3971_v7, %v1552_v28  ;;  %3072 = vpow2.f32 %v1595_v33 }
 0x612   : > { %v4018_v56 = vpop.eup %3064  ;;  %3074 = vpow2.f32 %v1601_v34  ;;  %v1605_v49 = vmul.f32 1.442695, %v1577_v42  ;;  %v1921_v28 = vrot.slane %v1920_v29, 1 }
 0x613   : > { %v1599_v43 = vmul.f32 1.442695, %v1574_v32  ;;  %v1562_v31 = vpop.xlane.xlu1 %1561  ;;  %1619 = vadd.xlane.f32.xlu0 %v4018_v56  ;;  %v4024_v7 = vpop.eup %3066 }
 0x614   : > { %v1556_v17 = vpop.xlane.xlu0 %1555  ;;  %1621 = vadd.xlane.f32.xlu1 %v4016_v48  ;;  %v1579_v9 = vsub.f32 %v3977_v25, %v1562_v31 }
 0x615   : > { %v1576_v0 = vsub.f32 %v3981_v26, %v1556_v17  ;;  %3076 = vpow2.f32 %v1599_v43  ;;  %v1922_v17 = vadd.f32 %v1921_v28, %v1920_v29 }
 0x616   : > { %v4026_v51 = vpop.eup %3068  ;;  %3078 = vpow2.f32 %v1605_v49  ;;  %v1609_v52 = vmul.f32 1.442695, %v1579_v9 }
 0x617   : > { %v1603_v6 = vmul.f32 1.442695, %v1576_v0  ;;  %1623 = vadd.xlane.f32.xlu0 %v4026_v51  ;;  %v4031_v40 = vpop.eup %3070 }
 0x618   : > { %v1560_v19 = vpop.xlane.xlu0 %1559  ;;  %1625 = vadd.xlane.f32.xlu1 %v4024_v7 }
 0x619   : > { %v1578_v59 = vsub.f32 %v3987_v23, %v1560_v19  ;;  %3080 = vpow2.f32 %v1603_v6  ;;  %v1924_v6 = vmul.f32 0.0078125, %v1922_v17 }
 0x61b   : > { %v1607_v26 = vmul.f32 1.442695, %v1578_v59  ;;  %v4033_v50 = vpop.eup %3072  ;;  %v1931_v59 = vld [vmem:[%s4260_s5] sm:$0xff] }
 0x61c   : > { %v1564_v25 = vpop.xlane.xlu0 %1563  ;;  %1629 = vadd.xlane.f32.xlu1 %v4031_v40  ;;  %1627 = vadd.xlane.f32.xlu0 %v4033_v50  ;;  %v4038_v20 = vpop.eup %3074 }
 0x61d   : > { %3082 = vpow2.f32 %v1607_v26  ;;  %v1580_v46 = vsub.f32 %v3992_v41, %v1564_v25  ;;  %v1925_v25 = vsub.f32 0.0, %v1924_v6 }
 0x61e   : > { %3084 = vpow2.f32 %v1609_v52 }
 0x61f   : > { %v1611_v44 = vmul.f32 1.442695, %v1580_v46  ;;  %v4040_v23 = vpop.eup %3076  ;;  %v1926_v29 = vmul.f32 1.442695, %v1925_v25 }
 0x620   : > { %1633 = vadd.xlane.f32.xlu1 %v4038_v20  ;;  %1631 = vadd.xlane.f32.xlu0 %v4040_v23  ;;  %v4044_v2 = vpop.eup %3078 }
 0x621   : > { %3086 = vpow2.f32 %v1611_v44 }
 0x623   : > { %v4046_v58 = vpop.eup %3080 }
 0x624   : > { %1637 = vadd.xlane.f32.xlu1 %v4044_v2  ;;  %1635 = vadd.xlane.f32.xlu0 %v4046_v58 }
 0x627   : > { %v4050_v41 = vpop.eup %3082 }
 0x628   : > { %v4052_v62 = vpop.eup %3084  ;;  %1639 = vadd.xlane.f32.xlu0 %v4050_v41 }
 0x629   : > { %1641 = vadd.xlane.f32.xlu1 %v4052_v62 }
 0x62b   : > { %v4056_v11 = vpop.eup %3086 }
 0x62c   : > { %1643 = vadd.xlane.f32.xlu0 %v4056_v11 }
 0x698   : > { %v1616_v47 = vpop.xlane.xlu0 %1615 }
 0x699   : > { %v1614_v35 = vpop.xlane.xlu1 %1613  ;;  %3088 = vrcp.f32 %v1616_v47 }
 0x69a   : > { %3090 = vrcp.f32 %v1614_v35 }
 0x69d   : > { %v1618_v10 = vpop.xlane.xlu1 %1617 }
 0x69e   : > { %3092 = vrcp.f32 %v1618_v10 }
 0x6a0   : > { %v1620_v22 = vpop.xlane.xlu0 %1619 }
 0x6a1   : > { %v1622_v33 = vpop.xlane.xlu1 %1621  ;;  %3094 = vrcp.f32 %v1620_v22 }
 0x6a2   : > { %3096 = vrcp.f32 %v1622_v33 }
 0x6a3   : > { %v3089_v34 = vpop.eup %3088 }
 0x6a4   : > { %v3091_v42 = vpop.eup %3090  ;;  %v1662_v32 = vmul.f32 %v3089_v34, %v4003_v14  ;;  %v1624_v31 = vpop.xlane.xlu0 %1623  ;;  %v1932_v14 = vld [vmem:[%s4260_s5 + $0x8] sm:$0xff]  ;;  %v1934_v34 = vld [vmem:[%s4260_s5 + $0x18] sm:$0xff] }
 0x6a5   : > { %v1626_v43 = vpop.xlane.xlu1 %1625  ;;  %v1661_v8 = vmul.f32 %v3091_v42, %v4005_v3  ;;  %3098 = vrcp.f32 %v1624_v31  ;;  %v2852_v57 = vpack.c.bf16 %v1932_v14, %v1931_v59 }
 0x6a6   : > { %3100 = vrcp.f32 %v1626_v43 }
 0x6a7   : > { %v1677_v49 = vpack.c.bf16 %v1662_v32, %v1661_v8 }
 0x6a8   : > { %v3093_v19 = vpop.eup %3092 }
 0x6a9   : > { %v1630_v0 = vpop.xlane.xlu1 %1629  ;;  %2760 = vmatprep.mubr.bf16.mxu0 %v1677_v49  ;;  %v1628_v9 = vpop.xlane.xlu0 %1627  ;;  %v1663_v46 = vmul.f32 %v3093_v19, %v4011_v60 }
 0x6aa   : > { %3102 = vrcp.f32 %v1628_v9 }
 0x6ab   : > { %v3095_v52 = vpop.eup %3094  ;;  %3104 = vrcp.f32 %v1630_v0 }
 0x6ac   : > { %v1664_v44 = vmul.f32 %v3095_v52, %v4018_v56  ;;  %v3097_v12 = vpop.eup %3096  ;;  %v1933_v56 = vld [vmem:[%s4260_s5 + $0x10] sm:$0xff] }
 0x6ad   : > { %v1634_v3 = vpop.xlane.xlu1 %1633  ;;  %v1632_v26 = vpop.xlane.xlu0 %1631  ;;  %v1665_v33 = vmul.f32 %v3097_v12, %v4016_v48 }
 0x6ae   : > { %3106 = vrcp.f32 %v1632_v26  ;;  %v1678_v47 = vpack.c.bf16 %v1664_v44, %v1663_v46 }
 0x6af   : > { %v3099_v35 = vpop.eup %3098  ;;  %3108 = vrcp.f32 %v1634_v3 }
 0x6b0   : > { %2761 = vmatmul.mubr.bf16.vlgmr.msra.gmra.mrb[48].mxu0 %v1678_v47  ;;  %v1666_v22 = vmul.f32 %v3099_v35, %v4026_v51  ;;  %v3101_v28 = vpop.eup %3100 }
 0x6b1   : > { %v1638_v27 = vpop.xlane.xlu1 %1637  ;;  %v1636_v10 = vpop.xlane.xlu0 %1635  ;;  %2854 = vmatpush3.bf16.xpose.msk.msra.mxu0 %vm3386_vm3, %v2852_v57  ;;  %v1667_v32 = vmul.f32 %v3101_v28, %v4024_v7 }
 0x6b2   : > { %3110 = vrcp.f32 %v1636_v10  ;;  %v1679_v60 = vpack.c.bf16 %v1666_v22, %v1665_v33  ;;  %2855 = vmatprep.subr.bf16.mxu0 %v3222_v30  ;;  %v2856_v30 = vpack.c.bf16 %v1934_v34, %v1933_v56 }
 0x6b3   : > { %3112 = vrcp.f32 %v1638_v27  ;;  %v3225_v27 = vmov 0  }
 0x6b4   : > { %v3103_v42 = vpop.eup %3102  ;;  %3114 = vpow2.f32 %v1926_v29  ;;  %2764 = vmatprep.mubr.bf16.mxu0 %v1679_v60  ;;  %2954 = vset.pattern.permute.xlu1 %v3225_v27 }
 0x6b5   : > { %v1640_v51 = vpop.xlane.xlu0 %1639  ;;  %v1668_v43 = vmul.f32 %v3103_v42, %v4033_v50  ;;  %v3105_v31 = vpop.eup %3104  ;;  %2955 = vset.pattern.permute.xlu0 %v3225_v27 }
 0x6b6   : > { %v1642_v48 = vpop.xlane.xlu1 %1641  ;;  %3116 = vrcp.f32 %v1640_v51  ;;  %v1669_v0 = vmul.f32 %v3105_v31, %v4031_v40 }
 0x6b7   : > { %3118 = vrcp.f32 %v1642_v48  ;;  %v1680_v8 = vpack.c.bf16 %v1668_v43, %v1667_v32 }
 0x6b8   : > { %v3107_v17 = vpop.eup %3106 }
 0x6b9   : > { %v1644_v49 = vpop.xlane.xlu0 %1643  ;;  %2765 = vmatmul.mubr.bf16.gmra.mrb[52].mxu0 %v1680_v8  ;;  %v1670_v9 = vmul.f32 %v3107_v17, %v4040_v23  ;;  %v3109_v6 = vpop.eup %3108 }
 0x6ba   : > { %3120 = vrcp.f32 %v1644_v49  ;;  %2858 = vmatpush3.bf16.xpose.msk.msra.mxu0 %vm3386_vm3, %v2856_v30  ;;  %v1671_v50 = vmul.f32 %v3109_v6, %v4038_v20 }
 0x6bb   : > { %v1681_v7 = vpack.c.bf16 %v1670_v9, %v1669_v0 }
 0x6bc   : > { %v3111_v19 = vpop.eup %3110 }
 0x6bd   : > { %2768 = vmatprep.mubr.bf16.mxu0 %v1681_v7  ;;  %v1672_v59 = vmul.f32 %v3111_v19, %v4046_v58  ;;  %v3113_v14 = vpop.eup %3112  ;;  %v4282_v58 = vmov 0.0  }
 0x6be   : > { %v3115_v52 = vpop.eup %3114  ;;  %v1673_v40 = vmul.f32 %v3113_v14, %v4044_v2  ;;  %v2020_v2 = vld [vmem:[#allocation2] sm:$0x1] }
 0x6bf   : > { %v1682_v3 = vpack.c.bf16 %v1672_v59, %v1671_v50  ;;  %v1928_v46 = vadd.f32 1.0, %v3115_v52  ;;  %2023 = vperm.xlu1 %2954, %v2020_v2  }
 0x6c0   : > { %v3117_v26 = vpop.eup %3116 }
 0x6c1   : > { %v3119_v25 = vpop.eup %3118  ;;  %2769 = vmatmul.mubr.bf16.gmra.mrb[56].mxu0 %v1682_v3  ;;  %v1674_v23 = vmul.f32 %v3117_v26, %v4050_v41  ;;  %3122 = vrcp.f32 %v1928_v46 }
 0x6c2   : > { %v1675_v57 = vmul.f32 %v3119_v25, %v4052_v62 }
 0x6c3   : > { %v1683_v12 = vpack.c.bf16 %v1674_v23, %v1673_v40 }
 0x6c4   : > { %v3121_v44 = vpop.eup %3120 }
 0x6c5   : > { %v1676_v47 = vmul.f32 %v3121_v44, %v4056_v11  ;;  %2772 = vmatprep.mubr.bf16.mxu0 %v1683_v12 }
 0x6c7   : > { %v1684_v20 = vpack.c.bf16 %v1676_v47, %v1675_v57 }
 0x6c9   : > { %2773 = vmatmul.mubr.bf16.gmra.mrb[60].mxu0 %v1684_v20 }
 0x6ca   : > { %2784 = vmatprep.mubr.msk.f32.mxu0 %vm4283_vm10, %v4282_v58 }
 0x6cb   : > { %v3123_v35 = vpop.eup %3122 }
 0x6d1   : > { %2785 = vmatmul.mubr.msk.f32.vlgmr.msra.gmra.mrb[64].mxu0 %vm531_vm2, %v3123_v35 }
 0x783   : > { %v2762_v41 = vpop.f32.mrb[48].mxu0 }
 0x784   : > { %v1808_v10 = vmin.f32 %v2762_v41, 0.0  ;;  %v1727_v62 = vpop.f32.mrb[49].mxu0  ;;  %vm1792_vm11 = vcmp.gt.f32.partialorder %v2762_v41, 0.0 }
 0x785   : > { %v1806_v29 = vmin.f32 %v1727_v62, 0.0  ;;  %v2763_v11 = vpop.f32.mrb[50].mxu0  ;;  %vm1790_vm12 = vcmp.gt.f32.partialorder %v1727_v62, 0.0 }
 0x786   : > { %v1826_v33 = vmul.f32 1.442695, %v1808_v10  ;;  %v1809_v22 = vmin.f32 %v2763_v11, 0.0  ;;  %v1730_v28 = vpop.f32.mrb[51].mxu0  ;;  %vm1793_vm14 = vcmp.gt.f32.partialorder %v2763_v11, 0.0 }
 0x787   : > { %v1822_v60 = vmul.f32 1.442695, %v1806_v29  ;;  %v1807_v56 = vmin.f32 %v1730_v28, 0.0  ;;  %vm1791_vm13 = vcmp.gt.f32.partialorder %v1730_v28, 0.0 }
 0x788   : > { %3124 = vpow2.f32 %v1826_v33  ;;  %v1828_v34 = vmul.f32 1.442695, %v1809_v22 }
 0x789   : > { %3126 = vpow2.f32 %v1822_v60  ;;  %v1824_v42 = vmul.f32 1.442695, %v1807_v56 }
 0x78a   : > { %3128 = vpow2.f32 %v1828_v34 }
 0x78b   : > { %3130 = vpow2.f32 %v1824_v42 }
 0x78c   : > { %v4097_v48 = vpop.f32.mrb[52].mxu0 }
 0x78d   : > { %v1812_v51 = vmin.f32 %v4097_v48, 0.0  ;;  %v4100_v32 = vpop.f32.mrb[53].mxu0  ;;  %vm1796_vm15 = vcmp.gt.f32.partialorder %v4097_v48, 0.0 }
 0x78e   : > { %v1810_v43 = vmin.f32 %v4100_v32, 0.0  ;;  %v4103_v31 = vpop.f32.mrb[54].mxu0  ;;  %vm1794_vm1 = vcmp.gt.f32.partialorder %v4100_v32, 0.0 }
 0x78f   : > { %v1834_v30 = vmul.f32 1.442695, %v1812_v51  ;;  %v1813_v8 = vmin.f32 %v4103_v31, 0.0  ;;  %v4106_v17 = vpop.f32.mrb[55].mxu0  ;;  %vm1797_vm0 = vcmp.gt.f32.partialorder %v4103_v31, 0.0 }
 0x790   : > { %v1830_v49 = vmul.f32 1.442695, %v1810_v43  ;;  %v1811_v0 = vmin.f32 %v4106_v17, 0.0  ;;  %v4284_v43 = vpack.c.bf16 %v3745_v45, %v3733_v18  ;;  %vm1795_vm4 = vcmp.gt.f32.partialorder %v4106_v17, 0.0 }
 0x791   : > { %3132 = vpow2.f32 %v1834_v30  ;;  %v1836_v9 = vmul.f32 1.442695, %v1813_v8 }
 0x792   : > { %3134 = vpow2.f32 %v1830_v49  ;;  %v1832_v6 = vmul.f32 1.442695, %v1811_v0  ;;  %v3125_v7 = vpop.eup %3124 }
 0x793   : > { %3136 = vpow2.f32 %v1836_v9  ;;  %v3127_v19 = vpop.eup %3126  ;;  %v2404_v50 = vadd.f32 -1.0, %v3125_v7 }
 0x794   : > { %3138 = vpow2.f32 %v1832_v6  ;;  %v4109_v59 = vpop.f32.mrb[56].mxu0  ;;  %v3129_v14 = vpop.eup %3128  ;;  %v2402_v52 = vadd.f32 -1.0, %v3127_v19 }
 0x795   : > { %v1816_v3 = vmin.f32 %v4109_v59, 0.0  ;;  %v4112_v26 = vpop.f32.mrb[57].mxu0  ;;  %v3131_v25 = vpop.eup %3130  ;;  %v2405_v40 = vadd.f32 -1.0, %v3129_v14  ;;  %v1872_v44 = vsel %vm1792_vm11, %v2762_v41, %v2404_v50  ;;  %vm1800_vm5 = vcmp.gt.f32.partialorder %v4109_v59, 0.0 }
 0x796   : > { %v1814_v23 = vmin.f32 %v4112_v26, 0.0  ;;  %v4115_v46 = vpop.f32.mrb[58].mxu0  ;;  %v2403_v12 = vadd.f32 -1.0, %v3131_v25  ;;  %v1870_v20 = vsel %vm1790_vm12, %v1727_v62, %v2402_v52  ;;  %vm1798_vm7 = vcmp.gt.f32.partialorder %v4112_v26, 0.0 }
 0x797   : > { %v1842_v57 = vmul.f32 1.442695, %v1816_v3  ;;  %v4117_v47 = vpop.f32.mrb[59].mxu0  ;;  %v1873_v58 = vsel %vm1793_vm14, %v2763_v11, %v2405_v40  ;;  %v1817_v2 = vmin.f32 %v4115_v46, 0.0  ;;  %vm1801_vm6 = vcmp.gt.f32.partialorder %v4115_v46, 0.0 }
 0x798   : > { %v1838_v35 = vmul.f32 1.442695, %v1814_v23  ;;  %v2865_v27 = vpack.c.bf16 %v1873_v58, %v1872_v44  ;;  %v1871_v10 = vsel %vm1791_vm13, %v1730_v28, %v2403_v12  ;;  %v1815_v29 = vmin.f32 %v4117_v47, 0.0 }
 0x799   : > { %3140 = vpow2.f32 %v1842_v57  ;;  %v2859_v33 = vpack.c.bf16 %v1871_v10, %v1870_v20  ;;  %v1844_v22 = vmul.f32 1.442695, %v1817_v2  ;;  %vm1799_vm8 = vcmp.gt.f32.partialorder %v4117_v47, 0.0 }
 0x79a   : > { %3142 = vpow2.f32 %v1838_v35  ;;  %v1840_v41 = vmul.f32 1.442695, %v1815_v29 }
 0x79b   : > { %v3133_v60 = vpop.eup %3132  ;;  %3144 = vpow2.f32 %v1844_v22  ;;  %2861 = vmatprep.subr.msk.bf16.mxu1 %vm3386_vm3, %v2859_v33 }
 0x79c   : > { %v3135_v56 = vpop.eup %3134  ;;  %v2408_v34 = vadd.f32 -1.0, %v3133_v60  ;;  %v4121_v42 = vpop.f32.mrb[60].mxu0  ;;  %3146 = vpow2.f32 %v1840_v41  ;;  %2864 = vmatpush3.bf16.xpose.msk.msra.mxu1 %vm3386_vm3, %v4284_v43 }
 0x79d   : > { %v3137_v62 = vpop.eup %3136  ;;  %v2406_v11 = vadd.f32 -1.0, %v3135_v56  ;;  %v1820_v28 = vmin.f32 %v4121_v42, 0.0  ;;  %v4127_v51 = vpop.f32.mrb[61].mxu0  ;;  %2867 = vmatprep.subr.msk.bf16.mxu1 %vm3386_vm3, %v2865_v27  ;;  %vm1804_vm9 = vcmp.gt.f32.partialorder %v4121_v42, 0.0 }
 0x79e   : > { %v3139_v30 = vpop.eup %3138  ;;  %v2409_v8 = vadd.f32 -1.0, %v3137_v62  ;;  %v1818_v49 = vmin.f32 %v4127_v51, 0.0  ;;  %v2775_v0 = vpop.f32.mrb[62].mxu0  ;;  %v1876_v9 = vsel %vm1796_vm15, %v4097_v48, %v2408_v34  ;;  %v4286_v34 = vpack.c.bf16 %v3792_v61, %v3776_v16 }
 0x79f   : > { %v2407_v18 = vadd.f32 -1.0, %v3139_v30  ;;  %v1850_v45 = vmul.f32 1.442695, %v1820_v28  ;;  %v1778_v6 = vpop.f32.mrb[63].mxu0  ;;  %v1874_v7 = vsel %vm1794_vm1, %v4100_v32, %v2406_v11  ;;  %v1821_v14 = vmin.f32 %v2775_v0, 0.0 }
 0x7a0   : > { %v1877_v19 = vsel %vm1797_vm0, %v4103_v31, %v2409_v8  ;;  %v1846_v50 = vmul.f32 1.442695, %v1818_v49  ;;  %v1819_v25 = vmin.f32 %v1778_v6, 0.0  ;;  %v4285_v31 = vpack.c.bf16 %v3739_v36, %v3737_v1 }
 0x7a1   : > { %v2877_v52 = vpack.c.bf16 %v1877_v19, %v1876_v9  ;;  %v1875_v3 = vsel %vm1795_vm4, %v4106_v17, %v2407_v18  ;;  %3148 = vpow2.f32 %v1850_v45  ;;  %v1852_v23 = vmul.f32 1.442695, %v1821_v14 }
 0x7a2   : > { %v2871_v40 = vpack.c.bf16 %v1875_v3, %v1874_v7  ;;  %3150 = vpow2.f32 %v1846_v50  ;;  %v1848_v44 = vmul.f32 1.442695, %v1819_v25  ;;  %vm1805_vm10 = vcmp.gt.f32.partialorder %v2775_v0, 0.0 }
 0x7a3   : > { %v3141_v48 = vpop.eup %3140  ;;  %3152 = vpow2.f32 %v1852_v23  ;;  %vm1802_vm11 = vcmp.gt.f32.partialorder %v4127_v51, 0.0  ;;  %vm1803_vm12 = vcmp.gt.f32.partialorder %v1778_v6, 0.0  ;;  %v4287_v8 = vpack.c.bf16 %v3785_v24, %v3771_v13 }
 0x7a4   : > { %v3143_v12 = vpop.eup %3142  ;;  %v2016_v57 = vpop.f32.mrb[64].mxu0  ;;  %v2412_v20 = vadd.f32 -1.0, %v3141_v48  ;;  %3154 = vpow2.f32 %v1848_v44  ;;  %2870 = vmatpush3.bf16.xpose.msk.msra.mxu1 %vm3386_vm3, %v4285_v31  ;;  %v4290_v13 = vpack.c.bf16 %v3860_v5, %v3844_v54  ;;  %v4291_v24 = vpack.c.bf16 %v3854_v55, %v3849_v39 }
 0x7a5   : > { %v2786_v32 = vpop.f32.mrb[65].mxu0  ;;  %2592 = vmatprep.mubr.msk.f32.mxu1 %vm531_vm2, %v2016_v57  ;;  %v3145_v17 = vpop.eup %3144  ;;  %v2410_v58 = vadd.f32 -1.0, %v3143_v12  ;;  %2873 = vmatprep.subr.msk.bf16.mxu1 %vm3386_vm3, %v2871_v40  ;;  %v4292_v18 = vlaneseq }
 0x7a6   : > { %v3147_v35 = vpop.eup %3146  ;;  %v2413_v2 = vadd.f32 -1.0, %v3145_v17  ;;  %v1880_v10 = vsel %vm1800_vm5, %v4109_v59, %v2412_v20 }
 0x7a7   : > { %v2411_v27 = vadd.f32 -1.0, %v3147_v35  ;;  %v1878_v36 = vsel %vm1798_vm7, %v4112_v26, %v2410_v58 }
 0x7a8   : > { %v1881_v1 = vsel %vm1801_vm6, %v4115_v46, %v2413_v2 }
 0x7a9   : > { %v2889_v29 = vpack.c.bf16 %v1881_v1, %v1880_v10  ;;  %v1879_v33 = vsel %vm1799_vm8, %v4117_v47, %v2411_v27 }
 0x7aa   : > { %v2883_v60 = vpack.c.bf16 %v1879_v33, %v1878_v36 }
 0x7ab   : > { %v3149_v22 = vpop.eup %3148 }
 0x7ac   : > { %v3151_v41 = vpop.eup %3150  ;;  %v2416_v56 = vadd.f32 -1.0, %v3149_v22  ;;  %2876 = vmatpush3.bf16.xpose.msk.msra.mxu1 %vm3386_vm3, %v4286_v34 }
 0x7ad   : > { %v3153_v59 = vpop.eup %3152  ;;  %v2414_v62 = vadd.f32 -1.0, %v3151_v41  ;;  %2879 = vmatprep.subr.msk.bf16.mxu1 %vm3386_vm3, %v2877_v52 }
 0x7ae   : > { %v3155_v46 = vpop.eup %3154  ;;  %v2417_v26 = vadd.f32 -1.0, %v3153_v59  ;;  %v1884_v11 = vsel %vm1804_vm9, %v4121_v42, %v2416_v56  ;;  %v4288_v42 = vpack.c.bf16 %v3826_v53, %v3807_v21  ;;  %v2024_v21 = vpop.permute.xlu1 %2023 }
 0x7af   : > { %v2415_v47 = vadd.f32 -1.0, %v3155_v46  ;;  %v1882_v16 = vsel %vm1802_vm11, %v4127_v51, %v2414_v62  ;;  %v4289_v51 = vpack.c.bf16 %v3819_v38, %v3816_v15  ;;  %v3226_v15 = vmov 1966171168  }
 0x7b0   : > { %v1885_v28 = vsel %vm1805_vm10, %v2775_v0, %v2417_v26  ;;  %v2204_v38 = vunpack.c.l.s4 %v3226_v15  ;;  %v2029_v53 = vrot.slane %v2024_v21, %v3425_v4 }
 0x7b1   : > { %v2901_v61 = vpack.c.bf16 %v1885_v28, %v1884_v11  ;;  %v1883_v43 = vsel %vm1803_vm12, %v1778_v6, %v2415_v47 }
 0x7b2   : > { %v2895_v30 = vpack.c.bf16 %v1883_v43, %v1882_v16  ;;  %v2205_v54 = vunpack.c.0.s8 %v2204_v38 }
 0x7b4   : > { %2882 = vmatpush3.bf16.xpose.msk.msra.mxu1 %vm3386_vm3, %v4287_v8  ;;  %v2208_v39 = vsub.s32 %v2205_v54, %v3422_v63 }
 0x7b5   : > { %2885 = vmatprep.subr.msk.bf16.mxu1 %vm3386_vm3, %v2883_v60 }
 0x7bc   : > { %2888 = vmatpush3.bf16.xpose.msk.msra.mxu1 %vm3386_vm3, %v4288_v42 }
 0x7bd   : > { %2891 = vmatprep.subr.msk.bf16.mxu1 %vm3386_vm3, %v2889_v29 }
 0x7c4   : > { %2894 = vmatpush3.bf16.xpose.msk.msra.mxu1 %vm3386_vm3, %v4289_v51 }
 0x7c5   : > { %2897 = vmatprep.subr.msk.bf16.mxu1 %vm3386_vm3, %v2895_v30 }
 0x7cc   : > { %2900 = vmatpush3.bf16.xpose.msk.msra.mxu1 %vm3386_vm3, %v4290_v13 }
 0x7cd   : > { %2903 = vmatprep.subr.msk.bf16.mxu1 %vm3386_vm3, %v2901_v61 }
 0x7d4   : > { %2906 = vmatpush3.bf16.xpose.msk.msra.mxu1 %vm3386_vm3, %v4291_v24 }
 0x7db   : > { %2593 = vmatmul.mubr.msk.f32.vlgmr.msra.gmra.mrb[4].mxu1 %vm531_vm2, %v2016_v57  ;;  %vm2220_vm2 = vcmp.lt.s32.totalorder %v4292_v18, 256 }
 0x8ae   : > { %v2195_v5 = vpop.f32.mrb[4].mxu1 }
 0x8af   : > { %v2196_v49 = vadd.f32 %v2195_v5, %v2029_v53  ;;  %v2197_v0 = vpop.f32.mrb[5].mxu1 }
 0x8b0   : > { %v2198_v9 = vadd.f32 %v2197_v0, %v2029_v53 }
 0x8b2   : > { %v2202_v37 = vcombine.low %v2196_v49, %v2198_v9 }
 0x8b4   : > { %v2209_v55 = vrot.slane %v2202_v37, %v2208_v39 }
 0x8b6   : > { %v2216_v45 = vrot.slane %v2209_v55, %v2208_v39 }
 0x8b8   : > { %2222 = vst.msk [vmem:[%s303_s18] sm:$0x3] %vm2220_vm2, %v2216_v45 }
 0x8b9   : > { %3170 = shalt.err (!%p3167_p3)
}
 0x8ba   : > { %s3171_s9 = scalar_lea.hbm %s4213_s22, 32  ;;  %s3175_s15 = scalar_lea.hbm %s4262_s7, 64 }
 0x8bb   : > { %p3172_p4 = scmp.ne.s32.totalorder %s4213_s22, %s3171_s9  ;;  %p3176_p9 = scmp.lt.u32.totalorder %s4213_s22, %s4262_s7 }
 0x8bc   : > { %p3177_p10 = scmp.lt.u32.totalorder %s3175_s15, %s3171_s9  ;;  %p3179_p12 = scmp.lt.u32.totalorder %s3171_s9, %s4213_s22 }
 0x8bd   : > { %p3173_p7 = pnand %p3172_p4, %p3309_p5 }
 0x8be   : > { %p3178_p11 = por %p3177_p10, %p3176_p9 }
 0x8bf   : > { %p3174_p8 = pneg %p3173_p7 }
 0x8c0   : > { %p3180_p13 = por %p3179_p12, %p3178_p11 }
 0x8c2   : > { %p3181_p0 = pnand %p3180_p13, %p3174_p8 }
 0x8c4   : > { %3184 = shalt.err (!%p3181_p0)
}
 0x8c5   : > { %2907 = dma.vmem_to_hbm [thread:$0]  (%p3309_p5), %s4215_s19, 32, %s4213_s22, %s2224_s23  }
 0x8c6 PF: > { %p2913_p1 = scmp.ge.s32.totalorder %s3219_s29, 2  ;;  %s2250_s18 = sand.u32 1, %s3207_s26  }
 0x8c7   : > { %s2251_s20 = scalar_lea.sflag [#allocation4], %s2250_s18 }
 0x8c8   : > { %p2910_p2 = pnand %p2913_p1, %p3313_p6 }
 0x8ca   : > { %3202 = dma.done.wait (!%p2910_p2), %s2251_s20, 32  }
 0x8cb   : > { %3204 = vsyncadd (!%p2910_p2), %s2251_s20, 4294967264  ;;  %p19_p3 = scmp.ge.s32.totalorder %s3296_s8, 4   ;;  %s4293_s26 = smov %s3211_s27 }
 0x8cc   : > { %s4294_s27 = smov %s3215_s28  ;;  %s4295_s28 = smov %s3307_s11 }
 0x8cd   : > { %s4296_s29 = smov %s3296_s8  ;;  %21 = sbr.rel (!%p19_p3) target bundleno = 6 (0x6), region = 89 }
 0x8d4   :  { %2256 = vsyncpa [#allocation4], 1 }
 0x8d5   :  { %2258 = vsyncpa [#allocation4 + $0x1], 1 }

</bundles_post_ra>
